<compile_context>
chip_gen: v7x
topology: tpu7x:2x2x1
jax: 0.10.0
libtpu: 0.0.40
codegen_flags: <defaults>
</compile_context>

<pallas_src>
from functools import partial

import jax
import jax.numpy as jnp
from jax.experimental import pallas as pl
from jax.experimental.pallas import tpu as pltpu

EPS = 1e-5


# ----------------------------------------------------------------------------
# Fused kernel: grid = (phase, tile).  Phase 0: h = x @ W1 + stats (VMEM).
# Phase 1: BN fold (once) + ReLU + h_hat @ W2 + b2 -> output tiles.
# ----------------------------------------------------------------------------
def _fused_mlp_kernel(x_ref, w1_ref, w2_ref, gamma_ref, beta_ref, b2_ref,
                      o_ref, h_sc, sum_sc, sumsq_sc, scale_sc, shift_sc,
                      *, inv_batch):
    phase = pl.program_id(0)
    i = pl.program_id(1)

    @pl.when(jnp.logical_and(phase == 0, i == 0))
    def _init_stats():
        sum_sc[...] = jnp.zeros_like(sum_sc)
        sumsq_sc[...] = jnp.zeros_like(sumsq_sc)

    @pl.when(phase == 0)
    def _linear1_and_stats():
        # MXU matmul with f32 accumulation (inputs may be bf16).
        h = jnp.dot(x_ref[...], w1_ref[...], preferred_element_type=jnp.float32)
        h_sc[i] = h                                   # keep h resident in VMEM
        sum_sc[...] += jnp.sum(h, axis=0, keepdims=True)
        sumsq_sc[...] += jnp.sum(h * h, axis=0, keepdims=True)

    @pl.when(jnp.logical_and(phase == 1, i == 0))
    def _fold_bn_once():
        mean = sum_sc[...] * inv_batch
        # Single-pass variance can go slightly negative from cancellation.
        var = jnp.maximum(sumsq_sc[...] * inv_batch - mean * mean, 0.0)
        scale = gamma_ref[...] * jax.lax.rsqrt(var + EPS)    # rsqrt -> EUP slot
        scale_sc[...] = scale
        shift_sc[...] = beta_ref[...] - mean * scale

    @pl.when(phase == 1)
    def _bn_relu_linear2():
        h_hat = jnp.maximum(h_sc[i] * scale_sc[...] + shift_sc[...], 0.0)
        y = jnp.dot(h_hat.astype(w2_ref.dtype), w2_ref[...],
                    preferred_element_type=jnp.float32)
        o_ref[...] = (y + b2_ref[...].astype(jnp.float32)).astype(o_ref.dtype)


# ----------------------------------------------------------------------------
# Two-pass path (megacore friendly): pass 1 = h + per-tile partial stats.
# ----------------------------------------------------------------------------
def _linear1_stats_kernel(x_ref, w1_ref, h_ref, psum_ref, psumsq_ref):
    h = jnp.dot(x_ref[...], w1_ref[...], preferred_element_type=jnp.float32)
    h_ref[...] = h.astype(h_ref.dtype)
    psum_ref[...] = jnp.sum(h, axis=0, keepdims=True)
    psumsq_ref[...] = jnp.sum(h * h, axis=0, keepdims=True)


def _bn_relu_linear2_kernel(scale_ref, shift_ref, h_ref, w2_ref, b2_ref, o_ref):
    h = h_ref[...].astype(jnp.float32)
    h_hat = jnp.maximum(h * scale_ref[...] + shift_ref[...], 0.0)
    y = jnp.dot(h_hat.astype(w2_ref.dtype), w2_ref[...],
                preferred_element_type=jnp.float32)
    o_ref[...] = (y + b2_ref[...].astype(jnp.float32)).astype(o_ref.dtype)


# ----------------------------------------------------------------------------
# Pallas-call plumbing
# ----------------------------------------------------------------------------
def _forward(x_m, w1_m, w2_m, gamma, beta, b2, *, B, in_dim, hidden_dim,
             out_dim, tile_b, n_tiles, out_dtype, use_bf16, fuse,
             single_buffer):

    def res_spec(shape, index_map):
        # Resident block (constant index_map, never re-fetched): no need for
        # the default double buffer -> frees VMEM for the streamed tiles.
        if single_buffer:
            return pl.BlockSpec(shape, index_map, pipeline_mode=pl.Buffered(1))
        return pl.BlockSpec(shape, index_map)

    if fuse:
        last = n_tiles - 1
        return pl.pallas_call(
            partial(_fused_mlp_kernel, inv_batch=1.0 / B),
            grid=(2, n_tiles),
            in_specs=[
                # x: streamed in phase 0; pinned to the last tile in phase 1 so
                # it is never re-fetched after the phase transition.
                pl.BlockSpec((tile_b, in_dim),
                             lambda p, i: (i * (1 - p) + last * p, 0)),
                res_spec((in_dim, hidden_dim), lambda p, i: (0, 0)),   # W1
                res_spec((hidden_dim, out_dim), lambda p, i: (0, 0)),  # W2
                res_spec((1, hidden_dim), lambda p, i: (0, 0)),        # gamma
                res_spec((1, hidden_dim), lambda p, i: (0, 0)),        # beta
                res_spec((1, out_dim), lambda p, i: (0, 0)),           # b2
            ],
            # Output block index frozen at 0 during phase 0 (nothing is written
            # then, so no HBM writeback happens until phase 1 moves the index).
            out_specs=pl.BlockSpec((tile_b, out_dim), lambda p, i: (i * p, 0)),
            out_shape=jax.ShapeDtypeStruct((B, out_dim), out_dtype),
            scratch_shapes=[
                pltpu.VMEM((n_tiles, tile_b, hidden_dim), jnp.float32),  # h
                pltpu.VMEM((1, hidden_dim), jnp.float32),                # sum
                pltpu.VMEM((1, hidden_dim), jnp.float32),                # sumsq
                pltpu.VMEM((1, hidden_dim), jnp.float32),                # scale
                pltpu.VMEM((1, hidden_dim), jnp.float32),                # shift
            ],
            compiler_params=pltpu.CompilerParams(
                dimension_semantics=("arbitrary", "arbitrary")),
        )(x_m, w1_m, w2_m, gamma, beta, b2)

    # ------------------- two-pass (megacore-friendly) path -------------------
    # h in bf16 halves the HBM round trip when the MXU path is bf16.
    h_dtype = jnp.bfloat16 if (use_bf16 and tile_b % 16 == 0) else jnp.float32

    h, psum, psumsq = pl.pallas_call(
        _linear1_stats_kernel,
        grid=(n_tiles,),
        in_specs=[
            pl.BlockSpec((tile_b, in_dim), lambda i: (i, 0)),
            res_spec((in_dim, hidden_dim), lambda i: (0, 0)),
        ],
        out_specs=(
            pl.BlockSpec((tile_b, hidden_dim), lambda i: (i, 0)),
            pl.BlockSpec((None, 1, hidden_dim), lambda i: (i, 0, 0)),
            pl.BlockSpec((None, 1, hidden_dim), lambda i: (i, 0, 0)),
        ),
        out_shape=(
            jax.ShapeDtypeStruct((B, hidden_dim), h_dtype),
            jax.ShapeDtypeStruct((n_tiles, 1, hidden_dim), jnp.float32),
            jax.ShapeDtypeStruct((n_tiles, 1, hidden_dim), jnp.float32),
        ),
        compiler_params=pltpu.CompilerParams(
            dimension_semantics=("parallel",)),   # partial stats -> megacore ok
    )(x_m, w1_m)

    # BN fold hoisted out of the per-tile loop: tiny XLA ops on (1, H) vectors.
    s1 = jnp.sum(psum, axis=0)
    s2 = jnp.sum(psumsq, axis=0)
    mean = s1 * (1.0 / B)
    var = jnp.maximum(s2 * (1.0 / B) - mean * mean, 0.0)
    scale = gamma * jax.lax.rsqrt(var + EPS)
    shift = beta - mean * scale

    return pl.pallas_call(
        _bn_relu_linear2_kernel,
        grid=(n_tiles,),
        in_specs=[
            res_spec((1, hidden_dim), lambda i: (0, 0)),        # scale
            res_spec((1, hidden_dim), lambda i: (0, 0)),        # shift
            pl.BlockSpec((tile_b, hidden_dim), lambda i: (i, 0)),
            res_spec((hidden_dim, out_dim), lambda i: (0, 0)),  # W2
            res_spec((1, out_dim), lambda i: (0, 0)),           # b2
        ],
        out_specs=pl.BlockSpec((tile_b, out_dim), lambda i: (i, 0)),
        out_shape=jax.ShapeDtypeStruct((B, out_dim), out_dtype),
        compiler_params=pltpu.CompilerParams(
            dimension_semantics=("parallel",)),
    )(scale, shift, h, w2_m, b2)


def prediction_mlp(x, w1, gamma, beta, w2, b2, *, tile_b=None, use_bf16=None,
                   out_dtype=None, fuse=None):
    """Forward pass of prediction_MLP in training mode (batch statistics)."""
    B, in_dim = x.shape
    hidden_dim = w1.shape[1]
    out_dim = w2.shape[1]
    out_dtype = x.dtype if out_dtype is None else out_dtype

    if tile_b is None:
        # Cap at 256: a 512-row f32 output tile (double-buffered) already pushes
        # v5e's 16 MiB default scoped-VMEM budget at production shapes.
        tile_b = B
        for cand in (256, 128, 64, 32, 16, 8):
            if B % cand == 0:
                tile_b = cand
                break
    assert B % tile_b == 0, "batch must be divisible by the batch tile"
    n_tiles = B // tile_b

    # bf16 MXU inputs (f32 accumulation / f32 stats) at SimSiam head sizes.
    if use_bf16 is None:
        use_bf16 = bool(x.dtype == jnp.float32
                        and (in_dim >= 512 or hidden_dim >= 512))
    mxu_dtype = jnp.bfloat16 if use_bf16 else x.dtype
    x_m = x.astype(mxu_dtype)
    w1_m = w1.astype(mxu_dtype)
    w2_m = w2.astype(mxu_dtype)

    if fuse is None:
        # Fused path keeps the full (B, hidden) h in VMEM scratch; only take it
        # while that stays well under the scoped VMEM budget (re-check on v7x).
        fuse = B * hidden_dim * 4 <= 8 * 1024 * 1024

    kwargs = dict(B=B, in_dim=in_dim, hidden_dim=hidden_dim, out_dim=out_dim,
                  tile_b=tile_b, n_tiles=n_tiles, out_dtype=out_dtype,
                  use_bf16=use_bf16, fuse=fuse)
    try:
        return _forward(x_m, w1_m, w2_m, gamma, beta, b2,
                        single_buffer=True, **kwargs)
    except Exception:
        # pipeline_mode=pl.Buffered(1) unavailable on this jax/libtpu: fall back
        # to default double buffering of the resident blocks.
        return _forward(x_m, w1_m, w2_m, gamma, beta, b2,
                        single_buffer=False, **kwargs)


# ----------------------------------------------------------------------------
# Params / reference
# ----------------------------------------------------------------------------
def init_params(key, in_dim, hidden_dim, out_dim):
    """Deterministic PyTorch-style (uniform +/- 1/sqrt(fan_in)) init."""
    k1, k2, k3, k4 = jax.random.split(key, 4)
    lim1 = 1.0 / jnp.sqrt(in_dim)
    lim2 = 1.0 / jnp.sqrt(hidden_dim)
    w1 = jax.random.uniform(k1, (in_dim, hidden_dim), jnp.float32, -lim1, lim1)
    b1 = jax.random.uniform(k2, (1, hidden_dim), jnp.float32, -lim1, lim1)
    gamma = jnp.ones((1, hidden_dim), jnp.float32)   # BatchNorm1d weight
    beta = jnp.zeros((1, hidden_dim), jnp.float32)   # BatchNorm1d bias
    w2 = jax.random.uniform(k3, (hidden_dim, out_dim), jnp.float32, -lim2, lim2)
    b2 = jax.random.uniform(k4, (1, out_dim), jnp.float32, -lim2, lim2)
    return w1, b1, gamma, beta, w2, b2


def reference(x, w1, b1, gamma, beta, w2, b2):
    # Exact PyTorch training-mode semantics, including the (BN-cancelled) b1.
    h = x @ w1 + b1
    mean = jnp.mean(h, axis=0, keepdims=True)
    var = jnp.mean((h - mean) ** 2, axis=0, keepdims=True)
    h = (h - mean) * jax.lax.rsqrt(var + EPS) * gamma + beta
    h = jnp.maximum(h, 0.0)
    return h @ w2 + b2


if __name__ == "__main__":
    # Small, lane-dense shapes consistent with prediction_MLP(in, hidden, out).
    B, in_dim, hidden_dim, out_dim = 32, 256, 128, 256

    key = jax.random.PRNGKey(0)
    kx, kp = jax.random.split(key)
    x = jax.random.normal(kx, (B, in_dim), jnp.float32)
    w1, b1, gamma, beta, w2, b2 = init_params(kp, in_dim, hidden_dim, out_dim)

    ref = reference(x, w1, b1, gamma, beta, w2, b2)

    # 1) fused single-launch kernel (h never leaves VMEM), f32, strict check.
    out_fused = prediction_mlp(x, w1, gamma, beta, w2, b2,
                               tile_b=8, use_bf16=False, fuse=True)
    out_fused = jax.block_until_ready(out_fused)
    assert out_fused.shape == (B, out_dim)
    assert jnp.allclose(out_fused, ref, atol=1e-4, rtol=1e-4), "fused f32 mismatch"

    # 2) two-pass megacore-friendly path (per-tile partial stats), f32, strict.
    out_two = prediction_mlp(x, w1, gamma, beta, w2, b2,
                             tile_b=8, use_bf16=False, fuse=False)
    out_two = jax.block_until_ready(out_two)
    assert jnp.allclose(out_two, ref, atol=1e-4, rtol=1e-4), "two-pass f32 mismatch"

    # 3) bf16 MXU path (production numerics), looser tolerance.
    out_bf16 = prediction_mlp(x, w1, gamma, beta, w2, b2,
                              tile_b=16, use_bf16=True, fuse=True)
    out_bf16 = jax.block_until_ready(out_bf16)
    assert jnp.allclose(out_bf16, ref, atol=0.15, rtol=0.1), "bf16 path mismatch"

    print("KERNEL_OK")
</pallas_src>

<mosaic_0001>
module attributes {stable_mosaic.version = 11 : i64} {
  func.func @_fused_mlp_kernel(%arg0: i32, %arg1: i32, %arg2: memref<8x256xf32, #tpu.memory_space<vmem>>, %arg3: memref<256x128xf32, #tpu.memory_space<vmem>>, %arg4: memref<128x256xf32, #tpu.memory_space<vmem>>, %arg5: memref<1x128xf32, #tpu.memory_space<vmem>>, %arg6: memref<1x128xf32, #tpu.memory_space<vmem>>, %arg7: memref<1x256xf32, #tpu.memory_space<vmem>>, %arg8: memref<8x256xf32, #tpu.memory_space<vmem>>, %arg9: memref<4x8x128xf32, #tpu.memory_space<vmem>>, %arg10: memref<1x128xf32, #tpu.memory_space<vmem>>, %arg11: memref<1x128xf32, #tpu.memory_space<vmem>>, %arg12: memref<1x128xf32, #tpu.memory_space<vmem>>, %arg13: memref<1x128xf32, #tpu.memory_space<vmem>>) attributes {dimension_semantics = [#tpu.dimension_semantics<arbitrary>, #tpu.dimension_semantics<arbitrary>], iteration_bounds = array<i64: 2, 4>, scalar_prefetch = 0 : i64, scratch_operands = 5 : i64, tpu.core_type = #tpu.core_type<tc>, window_params = [{transform_indices = @transform_0, window_bounds = array<i64: 8, 256>}, {pipeline_mode = #tpu.pipeline_mode<synchronous>, transform_indices = @transform_1, window_bounds = array<i64: 256, 128>}, {pipeline_mode = #tpu.pipeline_mode<synchronous>, transform_indices = @transform_2, window_bounds = array<i64: 128, 256>}, {pipeline_mode = #tpu.pipeline_mode<synchronous>, transform_indices = @transform_3, window_bounds = array<i64: 1, 128>}, {pipeline_mode = #tpu.pipeline_mode<synchronous>, transform_indices = @transform_4, window_bounds = array<i64: 1, 128>}, {pipeline_mode = #tpu.pipeline_mode<synchronous>, transform_indices = @transform_5, window_bounds = array<i64: 1, 256>}, {transform_indices = @transform_6, window_bounds = array<i64: 8, 256>}]} {
    %c0_i32 = arith.constant 0 : i32
    %0 = arith.cmpi eq, %arg0, %c0_i32 : i32
    %c0_i32_0 = arith.constant 0 : i32
    %1 = arith.cmpi eq, %arg1, %c0_i32_0 : i32
    %2 = arith.andi %0, %1 : i1
    %3 = arith.extui %2 : i1 to i32
    %c0_i32_1 = arith.constant 0 : i32
    %4 = arith.cmpi ne, %3, %c0_i32_1 : i32
    scf.if %4 {
      %cst = arith.constant 0.000000e+00 : f32
      %16 = vector.broadcast %cst : f32 to vector<1x128xf32>
      %c0 = arith.constant 0 : index
      %c0_8 = arith.constant 0 : index
      %17 = vector.load %arg10[%c0, %c0_8] : memref<1x128xf32, #tpu.memory_space<vmem>>, vector<1x128xf32>
      tpu.vector_store %arg10[%c0, %c0_8], %16 {strides = array<i32>} : memref<1x128xf32, #tpu.memory_space<vmem>>, vector<1x128xf32>,
      %cst_9 = arith.constant 0.000000e+00 : f32
      %18 = vector.broadcast %cst_9 : f32 to vector<1x128xf32>
      %c0_10 = arith.constant 0 : index
      %c0_11 = arith.constant 0 : index
      %19 = vector.load %arg11[%c0_10, %c0_11] : memref<1x128xf32, #tpu.memory_space<vmem>>, vector<1x128xf32>
      tpu.vector_store %arg11[%c0_10, %c0_11], %18 {strides = array<i32>} : memref<1x128xf32, #tpu.memory_space<vmem>>, vector<1x128xf32>,
    } else {
    }
    %c0_i32_2 = arith.constant 0 : i32
    %5 = arith.cmpi eq, %arg0, %c0_i32_2 : i32
    %6 = arith.extui %5 : i1 to i32
    %c0_i32_3 = arith.constant 0 : i32
    %7 = arith.cmpi ne, %6, %c0_i32_3 : i32
    scf.if %7 {
      %c0 = arith.constant 0 : index
      %c0_8 = arith.constant 0 : index
      %16 = vector.load %arg2[%c0, %c0_8] : memref<8x256xf32, #tpu.memory_space<vmem>>, vector<8x256xf32>
      %c0_9 = arith.constant 0 : index
      %c0_10 = arith.constant 0 : index
      %17 = vector.load %arg3[%c0_9, %c0_10] : memref<256x128xf32, #tpu.memory_space<vmem>>, vector<256x128xf32>
      %cst = arith.constant dense<0.000000e+00> : vector<8x128xf32>
      %18 = tpu.matmul %16, %17, %cst {dimension_numbers = #tpu.dot_dimension_numbers<[1], [0], [0], [1], [0, 0, 1, 1], [], []>} : vector<8x256xf32>, vector<256x128xf32>, vector<8x128xf32> -> vector<8x128xf32>
      %19 = arith.index_cast %arg1 : i32 to index
      %c0_11 = arith.constant 0 : index
      %c0_12 = arith.constant 0 : index
      %20 = vector.load %arg9[%19, %c0_11, %c0_12] : memref<4x8x128xf32, #tpu.memory_space<vmem>>, vector<1x8x128xf32>
      %21 = vector.shape_cast %20 : vector<1x8x128xf32> to vector<8x128xf32>
      %22 = vector.shape_cast %18 : vector<8x128xf32> to vector<1x8x128xf32>
      tpu.vector_store %arg9[%19, %c0_11, %c0_12], %22 {strides = array<i32>} : memref<4x8x128xf32, #tpu.memory_space<vmem>>, vector<1x8x128xf32>,
      %c0_13 = arith.constant 0 : index
      %c0_14 = arith.constant 0 : index
      %23 = vector.load %arg10[%c0_13, %c0_14] : memref<1x128xf32, #tpu.memory_space<vmem>>, vector<1x128xf32>
      %cst_15 = arith.constant dense<0.000000e+00> : vector<128xf32>
      %24 = vector.multi_reduction <add>, %18, %cst_15 [0] : vector<8x128xf32> to vector<128xf32>
      %25 = vector.shape_cast %24 : vector<128xf32> to vector<1x128xf32>
      %26 = arith.addf %23, %25 : vector<1x128xf32>
      %c0_16 = arith.constant 0 : index
      %c0_17 = arith.constant 0 : index
      %27 = vector.load %arg10[%c0_16, %c0_17] : memref<1x128xf32, #tpu.memory_space<vmem>>, vector<1x128xf32>
      tpu.vector_store %arg10[%c0_16, %c0_17], %26 {strides = array<i32>} : memref<1x128xf32, #tpu.memory_space<vmem>>, vector<1x128xf32>,
      %c0_18 = arith.constant 0 : index
      %c0_19 = arith.constant 0 : index
      %28 = vector.load %arg11[%c0_18, %c0_19] : memref<1x128xf32, #tpu.memory_space<vmem>>, vector<1x128xf32>
      %29 = arith.mulf %18, %18 : vector<8x128xf32>
      %cst_20 = arith.constant dense<0.000000e+00> : vector<128xf32>
      %30 = vector.multi_reduction <add>, %29, %cst_20 [0] : vector<8x128xf32> to vector<128xf32>
      %31 = vector.shape_cast %30 : vector<128xf32> to vector<1x128xf32>
      %32 = arith.addf %28, %31 : vector<1x128xf32>
      %c0_21 = arith.constant 0 : index
      %c0_22 = arith.constant 0 : index
      %33 = vector.load %arg11[%c0_21, %c0_22] : memref<1x128xf32, #tpu.memory_space<vmem>>, vector<1x128xf32>
      tpu.vector_store %arg11[%c0_21, %c0_22], %32 {strides = array<i32>} : memref<1x128xf32, #tpu.memory_space<vmem>>, vector<1x128xf32>,
    } else {
    }
    %c1_i32 = arith.constant 1 : i32
    %8 = arith.cmpi eq, %arg0, %c1_i32 : i32
    %c0_i32_4 = arith.constant 0 : i32
    %9 = arith.cmpi eq, %arg1, %c0_i32_4 : i32
    %10 = arith.andi %8, %9 : i1
    %11 = arith.extui %10 : i1 to i32
    %c0_i32_5 = arith.constant 0 : i32
    %12 = arith.cmpi ne, %11, %c0_i32_5 : i32
    scf.if %12 {
      %c0 = arith.constant 0 : index
      %c0_8 = arith.constant 0 : index
      %16 = vector.load %arg10[%c0, %c0_8] : memref<1x128xf32, #tpu.memory_space<vmem>>, vector<1x128xf32>
      %cst = arith.constant 3.125000e-02 : f32
      %17 = vector.broadcast %cst : f32 to vector<1x128xf32>
      %18 = arith.mulf %16, %17 : vector<1x128xf32>
      %c0_9 = arith.constant 0 : index
      %c0_10 = arith.constant 0 : index
      %19 = vector.load %arg11[%c0_9, %c0_10] : memref<1x128xf32, #tpu.memory_space<vmem>>, vector<1x128xf32>
      %cst_11 = arith.constant 3.125000e-02 : f32
      %20 = vector.broadcast %cst_11 : f32 to vector<1x128xf32>
      %21 = arith.mulf %19, %20 : vector<1x128xf32>
      %22 = arith.mulf %18, %18 : vector<1x128xf32>
      %23 = arith.subf %21, %22 : vector<1x128xf32>
      %cst_12 = arith.constant 0.000000e+00 : f32
      %24 = vector.broadcast %cst_12 : f32 to vector<1x128xf32>
      %25 = arith.maximumf %23, %24 : vector<1x128xf32>
      %c0_13 = arith.constant 0 : index
      %c0_14 = arith.constant 0 : index
      %26 = vector.load %arg5[%c0_13, %c0_14] : memref<1x128xf32, #tpu.memory_space<vmem>>, vector<1x128xf32>
      %cst_15 = arith.constant 9.99999974E-6 : f32
      %27 = vector.broadcast %cst_15 : f32 to vector<1x128xf32>
      %28 = arith.addf %25, %27 : vector<1x128xf32>
      %29 = math.rsqrt %28 : vector<1x128xf32>
      %30 = arith.mulf %26, %29 : vector<1x128xf32>
      %c0_16 = arith.constant 0 : index
      %c0_17 = arith.constant 0 : index
      %31 = vector.load %arg12[%c0_16, %c0_17] : memref<1x128xf32, #tpu.memory_space<vmem>>, vector<1x128xf32>
      tpu.vector_store %arg12[%c0_16, %c0_17], %30 {strides = array<i32>} : memref<1x128xf32, #tpu.memory_space<vmem>>, vector<1x128xf32>,
      %c0_18 = arith.constant 0 : index
      %c0_19 = arith.constant 0 : index
      %32 = vector.load %arg6[%c0_18, %c0_19] : memref<1x128xf32, #tpu.memory_space<vmem>>, vector<1x128xf32>
      %33 = arith.mulf %18, %30 : vector<1x128xf32>
      %34 = arith.subf %32, %33 : vector<1x128xf32>
      %c0_20 = arith.constant 0 : index
      %c0_21 = arith.constant 0 : index
      %35 = vector.load %arg13[%c0_20, %c0_21] : memref<1x128xf32, #tpu.memory_space<vmem>>, vector<1x128xf32>
      tpu.vector_store %arg13[%c0_20, %c0_21], %34 {strides = array<i32>} : memref<1x128xf32, #tpu.memory_space<vmem>>, vector<1x128xf32>,
    } else {
    }
    %c1_i32_6 = arith.constant 1 : i32
    %13 = arith.cmpi eq, %arg0, %c1_i32_6 : i32
    %14 = arith.extui %13 : i1 to i32
    %c0_i32_7 = arith.constant 0 : i32
    %15 = arith.cmpi ne, %14, %c0_i32_7 : i32
    scf.if %15 {
      %16 = arith.index_cast %arg1 : i32 to index
      %c0 = arith.constant 0 : index
      %c0_8 = arith.constant 0 : index
      %17 = vector.load %arg9[%16, %c0, %c0_8] : memref<4x8x128xf32, #tpu.memory_space<vmem>>, vector<1x8x128xf32>
      %18 = vector.shape_cast %17 : vector<1x8x128xf32> to vector<8x128xf32>
      %c0_9 = arith.constant 0 : index
      %c0_10 = arith.constant 0 : index
      %19 = vector.load %arg12[%c0_9, %c0_10] : memref<1x128xf32, #tpu.memory_space<vmem>>, vector<1x128xf32>
      %20 = vector.broadcast %19 : vector<1x128xf32> to vector<8x128xf32>
      %21 = arith.mulf %18, %20 : vector<8x128xf32>
      %c0_11 = arith.constant 0 : index
      %c0_12 = arith.constant 0 : index
      %22 = vector.load %arg13[%c0_11, %c0_12] : memref<1x128xf32, #tpu.memory_space<vmem>>, vector<1x128xf32>
      %23 = vector.broadcast %22 : vector<1x128xf32> to vector<8x128xf32>
      %24 = arith.addf %21, %23 : vector<8x128xf32>
      %cst = arith.constant 0.000000e+00 : f32
      %25 = vector.broadcast %cst : f32 to vector<8x128xf32>
      %26 = arith.maximumf %24, %25 : vector<8x128xf32>
      %c0_13 = arith.constant 0 : index
      %c0_14 = arith.constant 0 : index
      %27 = vector.load %arg4[%c0_13, %c0_14] : memref<128x256xf32, #tpu.memory_space<vmem>>, vector<128x256xf32>
      %cst_15 = arith.constant dense<0.000000e+00> : vector<8x256xf32>
      %28 = tpu.matmul %26, %27, %cst_15 {dimension_numbers = #tpu.dot_dimension_numbers<[1], [0], [0], [1], [0, 0, 1, 1], [], []>} : vector<8x128xf32>, vector<128x256xf32>, vector<8x256xf32> -> vector<8x256xf32>
      %c0_16 = arith.constant 0 : index
      %c0_17 = arith.constant 0 : index
      %29 = vector.load %arg7[%c0_16, %c0_17] : memref<1x256xf32, #tpu.memory_space<vmem>>, vector<1x256xf32>
      %30 = vector.broadcast %29 : vector<1x256xf32> to vector<8x256xf32>
      %31 = arith.addf %28, %30 : vector<8x256xf32>
      %c0_18 = arith.constant 0 : index
      %c0_19 = arith.constant 0 : index
      %32 = vector.load %arg8[%c0_18, %c0_19] : memref<8x256xf32, #tpu.memory_space<vmem>>, vector<8x256xf32>
      tpu.vector_store %arg8[%c0_18, %c0_19], %31 {strides = array<i32>} : memref<8x256xf32, #tpu.memory_space<vmem>>, vector<8x256xf32>,
    } else {
    }
    return
  }
  func.func @transform_0(%arg0: i32, %arg1: i32) -> (i32, i32) {
    %c1_i32 = arith.constant 1 : i32
    %0 = arith.subi %c1_i32, %arg0 : i32
    %1 = arith.muli %arg1, %0 : i32
    %c3_i32 = arith.constant 3 : i32
    %2 = arith.muli %c3_i32, %arg0 : i32
    %3 = arith.addi %1, %2 : i32
    %c0_i32 = arith.constant 0 : i32
    %c0_i32_0 = arith.constant 0 : i32
    return %3, %c0_i32 : i32, i32
  }
  func.func @transform_1(%arg0: i32, %arg1: i32) -> (i32, i32) {
    %c0_i32 = arith.constant 0 : i32
    %c0_i32_0 = arith.constant 0 : i32
    %c0_i32_1 = arith.constant 0 : i32
    return %c0_i32, %c0_i32_0 : i32, i32
  }
  func.func @transform_2(%arg0: i32, %arg1: i32) -> (i32, i32) {
    %c0_i32 = arith.constant 0 : i32
    %c0_i32_0 = arith.constant 0 : i32
    %c0_i32_1 = arith.constant 0 : i32
    return %c0_i32, %c0_i32_0 : i32, i32
  }
  func.func @transform_3(%arg0: i32, %arg1: i32) -> (i32, i32) {
    %c0_i32 = arith.constant 0 : i32
    %c0_i32_0 = arith.constant 0 : i32
    %c0_i32_1 = arith.constant 0 : i32
    return %c0_i32, %c0_i32_0 : i32, i32
  }
  func.func @transform_4(%arg0: i32, %arg1: i32) -> (i32, i32) {
    %c0_i32 = arith.constant 0 : i32
    %c0_i32_0 = arith.constant 0 : i32
    %c0_i32_1 = arith.constant 0 : i32
    return %c0_i32, %c0_i32_0 : i32, i32
  }
  func.func @transform_5(%arg0: i32, %arg1: i32) -> (i32, i32) {
    %c0_i32 = arith.constant 0 : i32
    %c0_i32_0 = arith.constant 0 : i32
    %c0_i32_1 = arith.constant 0 : i32
    return %c0_i32, %c0_i32_0 : i32, i32
  }
  func.func @transform_6(%arg0: i32, %arg1: i32) -> (i32, i32) {
    %0 = arith.muli %arg1, %arg0 : i32
    %c0_i32 = arith.constant 0 : i32
    %c0_i32_0 = arith.constant 0 : i32
    return %0, %c0_i32 : i32, i32
  }
}

module attributes {stable_mosaic.version = 11 : i64} {
  func.func @_fused_mlp_kernel(%arg0: i32, %arg1: i32, %arg2: memref<8x256xf32, #tpu.memory_space<vmem>>, %arg3: memref<256x128xf32, #tpu.memory_space<vmem>>, %arg4: memref<128x256xf32, #tpu.memory_space<vmem>>, %arg5: memref<1x128xf32, #tpu.memory_space<vmem>>, %arg6: memref<1x128xf32, #tpu.memory_space<vmem>>, %arg7: memref<1x256xf32, #tpu.memory_space<vmem>>, %arg8: memref<8x256xf32, #tpu.memory_space<vmem>>, %arg9: memref<4x8x128xf32, #tpu.memory_space<vmem>>, %arg10: memref<1x128xf32, #tpu.memory_space<vmem>>, %arg11: memref<1x128xf32, #tpu.memory_space<vmem>>, %arg12: memref<1x128xf32, #tpu.memory_space<vmem>>, %arg13: memref<1x128xf32, #tpu.memory_space<vmem>>) attributes {dimension_semantics = [#tpu.dimension_semantics<arbitrary>, #tpu.dimension_semantics<arbitrary>], iteration_bounds = array<i64: 2, 4>, scalar_prefetch = 0 : i64, scratch_operands = 5 : i64, tpu.core_type = #tpu.core_type<tc>, window_params = [{transform_indices = @transform_0, window_bounds = array<i64: 8, 256>}, {pipeline_mode = #tpu.pipeline_mode<synchronous>, transform_indices = @transform_1, window_bounds = array<i64: 256, 128>}, {pipeline_mode = #tpu.pipeline_mode<synchronous>, transform_indices = @transform_2, window_bounds = array<i64: 128, 256>}, {pipeline_mode = #tpu.pipeline_mode<synchronous>, transform_indices = @transform_3, window_bounds = array<i64: 1, 128>}, {pipeline_mode = #tpu.pipeline_mode<synchronous>, transform_indices = @transform_4, window_bounds = array<i64: 1, 128>}, {pipeline_mode = #tpu.pipeline_mode<synchronous>, transform_indices = @transform_5, window_bounds = array<i64: 1, 256>}, {transform_indices = @transform_6, window_bounds = array<i64: 8, 256>}]} {
    %c0_i32 = arith.constant 0 : i32
    %0 = arith.cmpi eq, %arg0, %c0_i32 : i32
    %c0_i32_0 = arith.constant 0 : i32
    %1 = arith.cmpi eq, %arg1, %c0_i32_0 : i32
    %2 = arith.andi %0, %1 : i1
    %3 = arith.extui %2 : i1 to i32
    %c0_i32_1 = arith.constant 0 : i32
    %4 = arith.cmpi ne, %3, %c0_i32_1 : i32
    scf.if %4 {
      %cst = arith.constant 0.000000e+00 : f32
      %16 = vector.broadcast %cst : f32 to vector<1x128xf32>
      %c0 = arith.constant 0 : index
      %c0_8 = arith.constant 0 : index
      %17 = vector.load %arg10[%c0, %c0_8] : memref<1x128xf32, #tpu.memory_space<vmem>>, vector<1x128xf32>
      tpu.vector_store %arg10[%c0, %c0_8], %16 {strides = array<i32>} : memref<1x128xf32, #tpu.memory_space<vmem>>, vector<1x128xf32>,
      %cst_9 = arith.constant 0.000000e+00 : f32
      %18 = vector.broadcast %cst_9 : f32 to vector<1x128xf32>
      %c0_10 = arith.constant 0 : index
      %c0_11 = arith.constant 0 : index
      %19 = vector.load %arg11[%c0_10, %c0_11] : memref<1x128xf32, #tpu.memory_space<vmem>>, vector<1x128xf32>
      tpu.vector_store %arg11[%c0_10, %c0_11], %18 {strides = array<i32>} : memref<1x128xf32, #tpu.memory_space<vmem>>, vector<1x128xf32>,
    } else {
    }
    %c0_i32_2 = arith.constant 0 : i32
    %5 = arith.cmpi eq, %arg0, %c0_i32_2 : i32
    %6 = arith.extui %5 : i1 to i32
    %c0_i32_3 = arith.constant 0 : i32
    %7 = arith.cmpi ne, %6, %c0_i32_3 : i32
    scf.if %7 {
      %c0 = arith.constant 0 : index
      %c0_8 = arith.constant 0 : index
      %16 = vector.load %arg2[%c0, %c0_8] : memref<8x256xf32, #tpu.memory_space<vmem>>, vector<8x256xf32>
      %c0_9 = arith.constant 0 : index
      %c0_10 = arith.constant 0 : index
      %17 = vector.load %arg3[%c0_9, %c0_10] : memref<256x128xf32, #tpu.memory_space<vmem>>, vector<256x128xf32>
      %cst = arith.constant dense<0.000000e+00> : vector<8x128xf32>
      %18 = tpu.matmul %16, %17, %cst {dimension_numbers = #tpu.dot_dimension_numbers<[1], [0], [0], [1], [0, 0, 1, 1], [], []>} : vector<8x256xf32>, vector<256x128xf32>, vector<8x128xf32> -> vector<8x128xf32>
      %19 = arith.index_cast %arg1 : i32 to index
      %c0_11 = arith.constant 0 : index
      %c0_12 = arith.constant 0 : index
      %20 = vector.load %arg9[%19, %c0_11, %c0_12] : memref<4x8x128xf32, #tpu.memory_space<vmem>>, vector<1x8x128xf32>
      %21 = vector.shape_cast %20 : vector<1x8x128xf32> to vector<8x128xf32>
      %22 = vector.shape_cast %18 : vector<8x128xf32> to vector<1x8x128xf32>
      tpu.vector_store %arg9[%19, %c0_11, %c0_12], %22 {strides = array<i32>} : memref<4x8x128xf32, #tpu.memory_space<vmem>>, vector<1x8x128xf32>,
      %c0_13 = arith.constant 0 : index
      %c0_14 = arith.constant 0 : index
      %23 = vector.load %arg10[%c0_13, %c0_14] : memref<1x128xf32, #tpu.memory_space<vmem>>, vector<1x128xf32>
      %cst_15 = arith.constant dense<0.000000e+00> : vector<128xf32>
      %24 = vector.multi_reduction <add>, %18, %cst_15 [0] : vector<8x128xf32> to vector<128xf32>
      %25 = vector.shape_cast %24 : vector<128xf32> to vector<1x128xf32>
      %26 = arith.addf %23, %25 : vector<1x128xf32>
      %c0_16 = arith.constant 0 : index
      %c0_17 = arith.constant 0 : index
      %27 = vector.load %arg10[%c0_16, %c0_17] : memref<1x128xf32, #tpu.memory_space<vmem>>, vector<1x128xf32>
      tpu.vector_store %arg10[%c0_16, %c0_17], %26 {strides = array<i32>} : memref<1x128xf32, #tpu.memory_space<vmem>>, vector<1x128xf32>,
      %c0_18 = arith.constant 0 : index
      %c0_19 = arith.constant 0 : index
      %28 = vector.load %arg11[%c0_18, %c0_19] : memref<1x128xf32, #tpu.memory_space<vmem>>, vector<1x128xf32>
      %29 = arith.mulf %18, %18 : vector<8x128xf32>
      %cst_20 = arith.constant dense<0.000000e+00> : vector<128xf32>
      %30 = vector.multi_reduction <add>, %29, %cst_20 [0] : vector<8x128xf32> to vector<128xf32>
      %31 = vector.shape_cast %30 : vector<128xf32> to vector<1x128xf32>
      %32 = arith.addf %28, %31 : vector<1x128xf32>
      %c0_21 = arith.constant 0 : index
      %c0_22 = arith.constant 0 : index
      %33 = vector.load %arg11[%c0_21, %c0_22] : memref<1x128xf32, #tpu.memory_space<vmem>>, vector<1x128xf32>
      tpu.vector_store %arg11[%c0_21, %c0_22], %32 {strides = array<i32>} : memref<1x128xf32, #tpu.memory_space<vmem>>, vector<1x128xf32>,
    } else {
    }
    %c1_i32 = arith.constant 1 : i32
    %8 = arith.cmpi eq, %arg0, %c1_i32 : i32
    %c0_i32_4 = arith.constant 0 : i32
    %9 = arith.cmpi eq, %arg1, %c0_i32_4 : i32
    %10 = arith.andi %8, %9 : i1
    %11 = arith.extui %10 : i1 to i32
    %c0_i32_5 = arith.constant 0 : i32
    %12 = arith.cmpi ne, %11, %c0_i32_5 : i32
    scf.if %12 {
      %c0 = arith.constant 0 : index
      %c0_8 = arith.constant 0 : index
      %16 = vector.load %arg10[%c0, %c0_8] : memref<1x128xf32, #tpu.memory_space<vmem>>, vector<1x128xf32>
      %cst = arith.constant 3.125000e-02 : f32
      %17 = vector.broadcast %cst : f32 to vector<1x128xf32>
      %18 = arith.mulf %16, %17 : vector<1x128xf32>
      %c0_9 = arith.constant 0 : index
      %c0_10 = arith.constant 0 : index
      %19 = vector.load %arg11[%c0_9, %c0_10] : memref<1x128xf32, #tpu.memory_space<vmem>>, vector<1x128xf32>
      %cst_11 = arith.constant 3.125000e-02 : f32
      %20 = vector.broadcast %cst_11 : f32 to vector<1x128xf32>
      %21 = arith.mulf %19, %20 : vector<1x128xf32>
      %22 = arith.mulf %18, %18 : vector<1x128xf32>
      %23 = arith.subf %21, %22 : vector<1x128xf32>
      %cst_12 = arith.constant 0.000000e+00 : f32
      %24 = vector.broadcast %cst_12 : f32 to vector<1x128xf32>
      %25 = arith.maximumf %23, %24 : vector<1x128xf32>
      %c0_13 = arith.constant 0 : index
      %c0_14 = arith.constant 0 : index
      %26 = vector.load %arg5[%c0_13, %c0_14] : memref<1x128xf32, #tpu.memory_space<vmem>>, vector<1x128xf32>
      %cst_15 = arith.constant 9.99999974E-6 : f32
      %27 = vector.broadcast %cst_15 : f32 to vector<1x128xf32>
      %28 = arith.addf %25, %27 : vector<1x128xf32>
      %29 = math.rsqrt %28 : vector<1x128xf32>
      %30 = arith.mulf %26, %29 : vector<1x128xf32>
      %c0_16 = arith.constant 0 : index
      %c0_17 = arith.constant 0 : index
      %31 = vector.load %arg12[%c0_16, %c0_17] : memref<1x128xf32, #tpu.memory_space<vmem>>, vector<1x128xf32>
      tpu.vector_store %arg12[%c0_16, %c0_17], %30 {strides = array<i32>} : memref<1x128xf32, #tpu.memory_space<vmem>>, vector<1x128xf32>,
      %c0_18 = arith.constant 0 : index
      %c0_19 = arith.constant 0 : index
      %32 = vector.load %arg6[%c0_18, %c0_19] : memref<1x128xf32, #tpu.memory_space<vmem>>, vector<1x128xf32>
      %33 = arith.mulf %18, %30 : vector<1x128xf32>
      %34 = arith.subf %32, %33 : vector<1x128xf32>
      %c0_20 = arith.constant 0 : index
      %c0_21 = arith.constant 0 : index
      %35 = vector.load %arg13[%c0_20, %c0_21] : memref<1x128xf32, #tpu.memory_space<vmem>>, vector<1x128xf32>
      tpu.vector_store %arg13[%c0_20, %c0_21], %34 {strides = array<i32>} : memref<1x128xf32, #tpu.memory_space<vmem>>, vector<1x128xf32>,
    } else {
    }
    %c1_i32_6 = arith.constant 1 : i32
    %13 = arith.cmpi eq, %arg0, %c1_i32_6 : i32
    %14 = arith.extui %13 : i1 to i32
    %c0_i32_7 = arith.constant 0 : i32
    %15 = arith.cmpi ne, %14, %c0_i32_7 : i32
    scf.if %15 {
      %16 = arith.index_cast %arg1 : i32 to index
      %c0 = arith.constant 0 : index
      %c0_8 = arith.constant 0 : index
      %17 = vector.load %arg9[%16, %c0, %c0_8] : memref<4x8x128xf32, #tpu.memory_space<vmem>>, vector<1x8x128xf32>
      %18 = vector.shape_cast %17 : vector<1x8x128xf32> to vector<8x128xf32>
      %c0_9 = arith.constant 0 : index
      %c0_10 = arith.constant 0 : index
      %19 = vector.load %arg12[%c0_9, %c0_10] : memref<1x128xf32, #tpu.memory_space<vmem>>, vector<1x128xf32>
      %20 = vector.broadcast %19 : vector<1x128xf32> to vector<8x128xf32>
      %21 = arith.mulf %18, %20 : vector<8x128xf32>
      %c0_11 = arith.constant 0 : index
      %c0_12 = arith.constant 0 : index
      %22 = vector.load %arg13[%c0_11, %c0_12] : memref<1x128xf32, #tpu.memory_space<vmem>>, vector<1x128xf32>
      %23 = vector.broadcast %22 : vector<1x128xf32> to vector<8x128xf32>
      %24 = arith.addf %21, %23 : vector<8x128xf32>
      %cst = arith.constant 0.000000e+00 : f32
      %25 = vector.broadcast %cst : f32 to vector<8x128xf32>
      %26 = arith.maximumf %24, %25 : vector<8x128xf32>
      %c0_13 = arith.constant 0 : index
      %c0_14 = arith.constant 0 : index
      %27 = vector.load %arg4[%c0_13, %c0_14] : memref<128x256xf32, #tpu.memory_space<vmem>>, vector<128x256xf32>
      %cst_15 = arith.constant dense<0.000000e+00> : vector<8x256xf32>
      %28 = tpu.matmul %26, %27, %cst_15 {dimension_numbers = #tpu.dot_dimension_numbers<[1], [0], [0], [1], [0, 0, 1, 1], [], []>} : vector<8x128xf32>, vector<128x256xf32>, vector<8x256xf32> -> vector<8x256xf32>
      %c0_16 = arith.constant 0 : index
      %c0_17 = arith.constant 0 : index
      %29 = vector.load %arg7[%c0_16, %c0_17] : memref<1x256xf32, #tpu.memory_space<vmem>>, vector<1x256xf32>
      %30 = vector.broadcast %29 : vector<1x256xf32> to vector<8x256xf32>
      %31 = arith.addf %28, %30 : vector<8x256xf32>
      %c0_18 = arith.constant 0 : index
      %c0_19 = arith.constant 0 : index
      %32 = vector.load %arg8[%c0_18, %c0_19] : memref<8x256xf32, #tpu.memory_space<vmem>>, vector<8x256xf32>
      tpu.vector_store %arg8[%c0_18, %c0_19], %31 {strides = array<i32>} : memref<8x256xf32, #tpu.memory_space<vmem>>, vector<8x256xf32>,
    } else {
    }
    return
  }
  func.func @transform_0(%arg0: i32, %arg1: i32) -> (i32, i32) {
    %c1_i32 = arith.constant 1 : i32
    %0 = arith.subi %c1_i32, %arg0 : i32
    %1 = arith.muli %arg1, %0 : i32
    %c3_i32 = arith.constant 3 : i32
    %2 = arith.muli %c3_i32, %arg0 : i32
    %3 = arith.addi %1, %2 : i32
    %c0_i32 = arith.constant 0 : i32
    %c0_i32_0 = arith.constant 0 : i32
    return %3, %c0_i32 : i32, i32
  }
  func.func @transform_1(%arg0: i32, %arg1: i32) -> (i32, i32) {
    %c0_i32 = arith.constant 0 : i32
    %c0_i32_0 = arith.constant 0 : i32
    %c0_i32_1 = arith.constant 0 : i32
    return %c0_i32, %c0_i32_0 : i32, i32
  }
  func.func @transform_2(%arg0: i32, %arg1: i32) -> (i32, i32) {
    %c0_i32 = arith.constant 0 : i32
    %c0_i32_0 = arith.constant 0 : i32
    %c0_i32_1 = arith.constant 0 : i32
    return %c0_i32, %c0_i32_0 : i32, i32
  }
  func.func @transform_3(%arg0: i32, %arg1: i32) -> (i32, i32) {
    %c0_i32 = arith.constant 0 : i32
    %c0_i32_0 = arith.constant 0 : i32
    %c0_i32_1 = arith.constant 0 : i32
    return %c0_i32, %c0_i32_0 : i32, i32
  }
  func.func @transform_4(%arg0: i32, %arg1: i32) -> (i32, i32) {
    %c0_i32 = arith.constant 0 : i32
    %c0_i32_0 = arith.constant 0 : i32
    %c0_i32_1 = arith.constant 0 : i32
    return %c0_i32, %c0_i32_0 : i32, i32
  }
  func.func @transform_5(%arg0: i32, %arg1: i32) -> (i32, i32) {
    %c0_i32 = arith.constant 0 : i32
    %c0_i32_0 = arith.constant 0 : i32
    %c0_i32_1 = arith.constant 0 : i32
    return %c0_i32, %c0_i32_0 : i32, i32
  }
  func.func @transform_6(%arg0: i32, %arg1: i32) -> (i32, i32) {
    %0 = arith.muli %arg1, %arg0 : i32
    %c0_i32 = arith.constant 0 : i32
    %c0_i32_0 = arith.constant 0 : i32
    return %0, %c0_i32 : i32, i32
  }
}

</mosaic_0001>

<bundles_post_ra>
// kernel: tpu_custom_call.1
= control target key start
LH: loop header
LB: loop body
LE: loop exit
PB: predicated region body
PF: predicated region fallthrough
CT: control target
= control target key end

     0   :  { %s1587_s0 = inlined_call_operand.hbm [shape: f32[32,256], index: 0, kind: input, shape index: {}]   ;;  %s1588_s1 = inlined_call_operand.hbm [shape: f32[256,128], index: 1, kind: input, shape index: {}]   ;;  %s1589_s2 = inlined_call_operand.hbm [shape: f32[128,256], index: 2, kind: input, shape index: {}]   ;;  %s1590_s3 = inlined_call_operand.vmem [shape: f32[1,128], index: 3, kind: input, shape index: {}]   ;;  %s1591_s4 = inlined_call_operand.vmem [shape: f32[1,128], index: 4, kind: input, shape index: {}]   ;;  %s1592_s5 = inlined_call_operand.vmem [shape: f32[1,256], index: 5, kind: input, shape index: {}]   ;;  %s1593_s6 = inlined_call_operand.hbm [shape: f32[32,256], index: 6, kind: output, shape index: {}]  }
   0x1   :  { %1607 = sst [smem:[#allocation23_spill]] %s1588_s1 }
   0x2   :  { %1608 = sst [smem:[#allocation24_spill]] %s1589_s2 }
   0x3   :  { %1609 = sst [smem:[#allocation25_spill]] %s1590_s3 }
   0x4   :  { %1610 = sst [smem:[#allocation26_spill]] %s1591_s4 }
   0x5   :  { %1611 = sst [smem:[#allocation27_spill]] %s1592_s5 }
   0x6   :  { %1612 = sst [smem:[#allocation28_spill]] %s1593_s6 }
   0x7   :  { %11 = vsyncpa [#allocation8], 0 }
   0x8   :  { %13 = vsyncpa [#allocation8 + $0x1], 0 }
   0x9   :  { %14 = vsyncpa [#allocation11], 0 }
   0xa   :  { %15 = vsyncpa [#allocation9], 0 }
   0xb   :  { %17 = vsyncpa [#allocation9 + $0x1], 0  ;;  %s1264_s21 = smov 0   ;;  %s1266_s22 = smov 0  }
   0xc   :  { %s1268_s23 = smov 0   ;;  %s1270_s24 = smov 0  }
   0xd   :  { %s1272_s25 = smov 0   ;;  %s1274_s26 = smov 0  }
   0xe   :  { %s1276_s27 = smov 0   ;;  %s1278_s28 = smov 0  }
   0xf   :  { %s1280_s29 = smov 0   ;;  %s1282_s30 = smov 0  }
  0x10   :  { %s1284_s7 = smov 0  }
  0x11 LB: > { %1613 = sst [smem:[#allocation17_spill]] %s1177_s21  ;;  %s748_s8 = sadd.s32 4294967295, %s1217_s7   ;;  %s1217_s7 = sphi %s1284_s7, %s23_s7   ;;  %s1213_s30 = sphi %s1282_s30, %s1658_s30   ;;  %s1209_s29 = sphi %s1280_s29, %s1657_s29   ;;  %s1205_s28 = sphi %s1278_s28, %s1648_s28   ;;  %s1201_s27 = sphi %s1276_s27, %s1647_s27   ;;  %s1197_s26 = sphi %s1274_s26, %s1656_s26   ;;  %s1193_s25 = sphi %s1272_s25, %s1655_s25   ;;  %s1189_s24 = sphi %s1270_s24, %s1654_s24   ;;  %s1185_s23 = sphi %s1268_s23, %s1653_s23   ;;  %s1181_s22 = sphi %s1266_s22, %s1652_s22   ;;  %s1177_s21 = sphi %s1264_s21, %s1651_s21  }
  0x12   : > { %1614 = sst [smem:[#allocation18_spill]] %s1201_s27  ;;  %s749_s9 = sadd.s32 4294967294, %s1217_s7  }
  0x13   : > { %1615 = sst [smem:[#allocation19_spill]] %s1209_s29  ;;  %p63_p0 = scmp.ne.s32.totalorder %s1193_s25, %s1189_s24 }
  0x14   : > { %1616 = sst [smem:[#allocation20_spill]] %s1213_s30  ;;  %p1320_p1 = scmp.eq.s32.totalorder %s748_s8, 0 }
  0x15   : > { %p193_p2 = scmp.ne.s32.totalorder %s1185_s23, %s1181_s22  ;;  %p194_p3 = scmp.eq.s32.totalorder %s748_s8, 7 }
  0x16   : > { %s1617_s10 = scalar_select %p1320_p1, 1, 0 }
  0x17   : > { %p1328_p4 = por %p1320_p1, %p63_p0  ;;  %p199_p5 = scmp.ne.s32.totalorder %s1181_s22, %s1177_s21 }
  0x18   : > { %p1334_p6 = por %p194_p3, %p193_p2  ;;  %p200_p7 = scmp.eq.s32.totalorder %s749_s9, 7 }
  0x19   : > { %s1618_s11 = scalar_select %p1328_p4, 1, 0 }
  0x1a   : > { %s1619_s12 = scalar_select %p1334_p6, 1, 0 }
  0x1b   : > { %p750_p8 = scmp.ge.s32.totalorder %s1217_s7, 1  ;;  %p207_p9 = scmp.lt.s32.totalorder %s1217_s7, 9 }
  0x1c   : > { %1620 = sst [smem:[#allocation21_spill]] %s1619_s12  ;;  %p1340_p10 = por %p200_p7, %p199_p5 }
  0x1d   : > { %p1344_p11 = pnand %p750_p8, %p207_p9  ;;  %s1219_s15 = smov [#allocation10]  }
  0x1e   : > { %s1621_s13 = scalar_select %p1340_p10, 1, 0 }
  0x1f   : > { %s1623_s14 = scalar_select %p1344_p11, 1, 0 }
  0x20   : > { %1622 = sst [smem:[#allocation22_spill]] %s1621_s13  ;;  %s219_s16 = sshll.u32 %s1219_s15, 4  ;;  %s220_s16 = int_to_ptr.vmem [resolvable:$true] %s219_s16 }
  0x21   : > { %p886_p12 = pneg %p1344_p11  ;;  %s1220_s18 = smov [#allocation12]  }
  0x22   : > { %s232_s19 = sshll.u32 %s1220_s18, 4  ;;  %s1625_s1 = sld [smem:[#allocation23_spill]]  ;;  %s1356_s19 = int_to_ptr.vmem [resolvable:$true] %s232_s19 }
  0x23   : > { %p1352_p13 = pnand %p886_p12, %p1320_p1 }
  0x25   : > { %p1007_p2 = pneg %p1352_p13 }
  0x28   : > { %s1005_s8 = scalar_lea.hbm %s1625_s1, 4096 }
  0x29   : > { %p1006_p0 = scmp.ne.s32.totalorder %s1625_s1, %s1005_s8  ;;  %p1012_p7 = scmp.lt.u32.totalorder %s1005_s8, %s1625_s1 }
  0x2b   : > { %p1008_p3 = pnand %p1007_p2, %p1006_p0 }
  0x2d   : > { %p1009_p5 = pneg %p1008_p3 }
  0x2f   : > { %p1014_p8 = pnand %p1012_p7, %p1009_p5 }
  0x31   : > { %1017 = shalt.err (!%p1014_p8)
}
  0x32   : > { %s1018_s18 = scalar_lea.vmem %s220_s16, 4096  ;;  %p1026_p6 = scmp.lt.s32.totalorder %s220_s16, %s220_s16 }
  0x33   : > { %p1019_p9 = scmp.ne.s32.totalorder %s220_s16, %s1018_s18  ;;  %p1027_p1 = scmp.lt.s32.totalorder %s1018_s18, %s1018_s18 }
  0x35   : > { %p1021_p12 = pnand %p1019_p9, %p1007_p2  ;;  %p1028_p4 = por %p1027_p1, %p1026_p6 }
  0x37   : > { %p1022_p10 = pneg %p1021_p12 }
  0x39   : > { %p1029_p11 = pnand %p1028_p4, %p1022_p10 }
  0x3b   : > { %1032 = shalt.err (!%p1029_p11)
}
  0x3c   : > { %s1221_s20 = smov 128   ;;  %s1222_s24 = smov 8  }
  0x3d   : > { %889 = dma.hbm_to_vmem [thread:$0]  (!%p1352_p13), %s1625_s1, 4096, %s220_s16, [#allocation11], %s1221_s20, %s1221_s20, %s1222_s24  }
  0x3e   : > { %s1626_s2 = sld [smem:[#allocation24_spill]] }
  0x44   : > { %s1033_s15 = scalar_lea.hbm %s1626_s2, 4096 }
  0x45   : > { %p1034_p0 = scmp.ne.s32.totalorder %s1626_s2, %s1033_s15  ;;  %p1040_p6 = scmp.lt.u32.totalorder %s1033_s15, %s1626_s2 }
  0x47   : > { %p1036_p1 = pnand %p1034_p0, %p1007_p2 }
  0x49   : > { %p1037_p4 = pneg %p1036_p1 }
  0x4b   : > { %p1042_p10 = pnand %p1040_p6, %p1037_p4 }
  0x4d   : > { %1045 = shalt.err (!%p1042_p10)
}
  0x4e   : > { %s1046_s16 = scalar_lea.vmem %s1356_s19, 4096  ;;  %p1054_p7 = scmp.lt.s32.totalorder %s1356_s19, %s1356_s19 }
  0x4f   : > { %p1047_p11 = scmp.ne.s32.totalorder %s1356_s19, %s1046_s16  ;;  %p1055_p8 = scmp.lt.s32.totalorder %s1046_s16, %s1046_s16 }
  0x51   : > { %p1049_p3 = pnand %p1047_p11, %p1007_p2  ;;  %p1056_p9 = por %p1055_p8, %p1054_p7 }
  0x53   : > { %p1050_p5 = pneg %p1049_p3 }
  0x55   : > { %p1057_p12 = pnand %p1056_p9, %p1050_p5 }
  0x57   : > { %1060 = shalt.err (!%p1057_p12)
}
  0x58   : > { %s1223_s5 = smov 256   ;;  %s1224_s6 = smov 16  }
  0x59   : > { %892 = dma.hbm_to_vmem [thread:$0]  (!%p1352_p13), %s1626_s2, 4096, %s1356_s19, [#allocation11], %s1223_s5, %s1223_s5, %s1224_s6  }
  0x5a   : > { %s32_s24 = sadd.s32 1, %s1209_s29  ;;  %s35_s21 = sadd.s32 1, %s1213_s30 }
  0x5b   : > { %p33_p2 = scmp.ge.s32.totalorder %s32_s24, 4  ;;  %s39_s13 = ssub.s32 1, %s1213_s30 }
  0x5c   : > { %s41_s8 = smul.u32 3, %s1213_s30  ;;  %s50_s17 = sadd.s32 1, %s1197_s26 }
  0x5d   : > { %s1660_s24 = smov (%p33_p2, %s32_s24), 0  ;;  %s1662_s21 = smov (!%p33_p2, %s35_s21), %s1213_s30 }
  0x5e   : > { %s40_s9 = smul.u32 %s1209_s29, %s39_s13  ;;  %p37_p0 = scmp.ge.s32.totalorder %s1662_s21, 2 }
  0x5f   : > { %p57_p1 = scmp.ne.s32.totalorder %s1197_s26, %s1193_s25  ;;  %p58_p13 = scmp.eq.s32.totalorder %s1217_s7, 0 }
  0x60   : > { %s42_s19 = sadd.s32 %s41_s8, %s40_s9  ;;  %s1664_s21 = smov (%p37_p0, %s1662_s21), 0 }
  0x61   : > { %p1419_p4 = por %p58_p13, %p57_p1  ;;  %s178_s18 = smul.u32 %s1209_s29, %s1213_s30 }
  0x62   : > { %s43_s16 = ssub.s32 1, %s1664_s21  ;;  %s45_s5 = smul.u32 3, %s1664_s21 }
  0x63   : > { %s44_s6 = smul.u32 %s43_s16, %s1660_s24  ;;  %s183_s12 = sadd.s32 1, %s1185_s23 }
  0x64   : > { %s179_s20 = smul.u32 %s1664_s21, %s1660_s24  ;;  %p903_p6 = scmp.lt.s32.totalorder %s1217_s7, 8 }
  0x65   : > { %s46_s13 = sadd.s32 %s45_s5, %s44_s6  ;;  %s255_s8 = sand.u32 1, %s1197_s26  }
  0x66   : > { %s47_s9 = ssub.s32 %s42_s19, %s46_s13  ;;  %s180_s1 = ssub.s32 %s178_s18, %s179_s20 }
  0x67   : > { %p48_p10 = scmp.eq.s32.totalorder %s47_s9, 0  ;;  %p181_p11 = scmp.eq.s32.totalorder %s180_s1, 0 }
  0x68   : > { %s754_s2 = sshll.u32 %s255_s8, 4  ;;  %s773_s30 = sshll.u32 %s42_s19, 8 }
  0x69   : > { %s1434_s4 = scalar_select %p48_p10, %s1197_s26, %s50_s17  }
  0x6a   : > { %s1437_s3 = scalar_select %p181_p11, %s1185_s23, %s183_s12  }
  0x6b   : > { %s1442_s16 = scalar_lea.hbm %s1587_s0, %s773_s30  ;;  %s259_s5 = scalar_lea.vmem [#allocation7], %s754_s2 }
  0x6c   : > { %s271_s6 = sshll.u32 %s259_s5, 4  ;;  %p1450_p3 = pnand %p903_p6, %p1419_p4  ;;  %s1444_s6 = int_to_ptr.vmem [resolvable:$true] %s271_s6 }
  0x6d   : > { %s256_s17 = scalar_lea.sflag [#allocation8], %s255_s8  ;;  %s1061_s27 = scalar_lea.hbm %s1442_s16, 256 }
  0x6e   : > { %p1062_p5 = scmp.ne.s32.totalorder %s1442_s16, %s1061_s27  ;;  %p1063_p7 = pneg %p1450_p3 }
  0x6f   : > { %s1066_s30 = scalar_lea.hbm %s1587_s0, 1024  ;;  %p1067_p12 = scmp.lt.u32.totalorder %s1442_s16, %s1587_s0 }
  0x70   : > { %p1064_p8 = pnand %p1063_p7, %p1062_p5  ;;  %p1068_p2 = scmp.lt.u32.totalorder %s1066_s30, %s1061_s27 }
  0x71   : > { %p1070_p1 = scmp.lt.u32.totalorder %s1061_s27, %s1442_s16 }
  0x72   : > { %p1065_p9 = pneg %p1064_p8  ;;  %p1069_p0 = por %p1068_p2, %p1067_p12 }
  0x74   : > { %p1071_p13 = por %p1070_p1, %p1069_p0 }
  0x76   : > { %p1072_p4 = pnand %p1071_p13, %p1065_p9 }
  0x78   : > { %1075 = shalt.err (!%p1072_p4)
}
  0x79   : > { %s1076_s18 = scalar_lea.vmem %s1444_s6, 256  ;;  %s1225_s12 = smov [#allocation7]  }
  0x7a   : > { %p1077_p6 = scmp.ne.s32.totalorder %s1444_s6, %s1076_s18  ;;  %s1081_s20 = sshll.u32 %s1225_s12, 4  ;;  %s1082_s20 = int_to_ptr.vmem [resolvable:$false] %s1081_s20 }
  0x7b   : > { %s1083_s13 = scalar_lea.vmem %s1082_s20, 512  ;;  %p1084_p5 = scmp.lt.s32.totalorder %s1444_s6, %s1082_s20 }
  0x7c   : > { %p1079_p10 = pnand %p1077_p6, %p1063_p7  ;;  %p1085_p8 = scmp.lt.s32.totalorder %s1083_s13, %s1076_s18 }
  0x7e   : > { %p1080_p11 = pneg %p1079_p10  ;;  %p1086_p12 = por %p1085_p8, %p1084_p5 }
  0x80   : > { %p1087_p2 = pnand %p1086_p12, %p1080_p11 }
  0x82   : > { %1090 = shalt.err (!%p1087_p2)
}
  0x83   : > { %896 = dma.hbm_to_vmem [thread:$0]  (!%p1450_p3), %s1442_s16, 256, %s1444_s6, %s256_s17  }
  0x84   : > { %p1629_p9 = scmp.ne.s32.totalorder %s1623_s14, 0 }
  0x85   : > { %s282_s8 = sand.u32 (!%p1629_p9), 1, %s1193_s25   ;;  %p1630_p7 = scmp.ne.s32.totalorder (!%p1629_p9), %s1618_s11, 0 }
  0x86   : > { %280 = sbr.rel (%p1629_p9) target bundleno = 745 (0x2e9), region = 44  ;;  %s1482_s9 = sshll.u32 (!%p1629_p9), %s282_s8, 4 }
  0x87   : > { %s283_s5 = scalar_lea.sflag (!%p1629_p9), [#allocation8], %s282_s8  ;;  %s286_s27 = scalar_lea.vmem (!%p1629_p9), [#allocation7], %s1482_s9 }
  0x8d   : > { %1164 = dma.done.wait (%p1630_p7), %s283_s5, 256  }
  0x8e   : > { %1166 = vsyncadd (%p1630_p7), %s283_s5, 4294967040  ;;  %p1631_p0 = scmp.ne.s32.totalorder %s1617_s10, 0 }
  0x90   : > { %1168 = dma.done.wait (%p1631_p0), [#allocation11], 8192  }
  0x91   : > { %1170 = vsyncadd (%p1631_p0), [#allocation11], 4294959104  ;;  %s1632_s14 = sld [smem:[#allocation18_spill]]  ;;  %s320_s16 = sand.u32 1, %s1181_s22  }
  0x92   : > { %p328_p3 = scmp.eq.s32.totalorder %s1205_s28, 0  ;;  %s761_s6 = sshll.u32 %s320_s16, 4 }
  0x93   : > { %s1500_s11 = scalar_lea.vmem [#allocation13], %s761_s6 }
  0x97   : > { %p329_p1 = scmp.eq.s32.totalorder %s1632_s14, 0 }
  0x99   : > { %p330_p13 = pnand %p329_p1, %p328_p3 }
  0x9a   : > { %v1226_v0 = vmov (!%p330_p13), 0.0  }
  0x9b   : > { %333 = sbr.rel (%p330_p13) target bundleno = 162 (0xa2), region = 60  ;;  %334 = vst [vmem:[#allocation3] sm:$0x1] (!%p330_p13), %v1226_v0  ;;  %335 = vst [vmem:[#allocation4] sm:$0x1] (!%p330_p13), %v1226_v0 }
  0xa2 PF: > { %p762_p4 = scmp.ne.s32.totalorder %s1205_s28, 0 }
  0xa3   : > { %v357_v1 = vld [vmem:[#allocation10 + $0x80] sm:$0xff] (!%p762_p4)  ;;  %v358_v2 = vld [vmem:[#allocation10 + $0x88] sm:$0xff] (!%p762_p4)  ;;  %v359_v6 = vld [vmem:[#allocation10 + $0x90] sm:$0xff] (!%p762_p4)  ;;  %s1633_s10 = sld [smem:[#allocation18_spill]] (!%p762_p4) }
  0xa4   : > { %338 = sbr.rel (%p762_p4) target bundleno = 430 (0x1ae), region = 64  ;;  %v341_v3 = vld [vmem:[#allocation10] sm:$0xff] (!%p762_p4)  ;;  %v810_v4 = vpack.c.bf16 (!%p762_p4), %v358_v2, %v357_v1  ;;  %v342_v5 = vld [vmem:[#allocation10 + $0x8] sm:$0xff] (!%p762_p4)  ;;  %v360_v7 = vld [vmem:[#allocation10 + $0x98] sm:$0xff] (!%p762_p4) }
  0xa5   : > { %v812_v8 = vpack.c.bf16 (!%p762_p4), %v342_v5, %v341_v3  ;;  %v814_v9 = vpack.c.bf16 (!%p762_p4), %v360_v7, %v359_v6  ;;  %v343_v10 = vld [vmem:[#allocation10 + $0x10] sm:$0xff] (!%p762_p4)  ;;  %v344_v11 = vld [vmem:[#allocation10 + $0x18] sm:$0xff] (!%p762_p4)  ;;  %v361_v12 = vld [vmem:[#allocation10 + $0xa0] sm:$0xff] (!%p762_p4) }
  0xa6   : > { %811 = vmatprep.subr.bf16.mxu0 (!%p762_p4), %v810_v4  ;;  %v362_v13 = vld [vmem:[#allocation10 + $0xa8] sm:$0xff] (!%p762_p4)  ;;  %v816_v14 = vpack.c.bf16 (!%p762_p4), %v344_v11, %v343_v10  ;;  %v345_v16 = vld [vmem:[#allocation10 + $0x20] sm:$0xff] (!%p762_p4)  ;;  %v363_v18 = vld [vmem:[#allocation10 + $0xb0] sm:$0xff] (!%p762_p4) }
  0xa7   : > { %813 = vmatpush3.bf16.msra.mxu0 (!%p762_p4), %v812_v8  ;;  %v818_v15 = vpack.c.bf16 (!%p762_p4), %v362_v13, %v361_v12  ;;  %v346_v17 = vld [vmem:[#allocation10 + $0x28] sm:$0xff] (!%p762_p4)  ;;  %v364_v19 = vld [vmem:[#allocation10 + $0xb8] sm:$0xff] (!%p762_p4)  ;;  %v347_v22 = vld [vmem:[#allocation10 + $0x30] sm:$0xff] (!%p762_p4) }
  0xa8   : > { %815 = vmatprep.subr.bf16.mxu0 (!%p762_p4), %v814_v9  ;;  %v820_v20 = vpack.c.bf16 (!%p762_p4), %v346_v17, %v345_v16  ;;  %v822_v21 = vpack.c.bf16 (!%p762_p4), %v364_v19, %v363_v18  ;;  %v348_v23 = vld [vmem:[#allocation10 + $0x38] sm:$0xff] (!%p762_p4)  ;;  %v365_v24 = vld [vmem:[#allocation10 + $0xc0] sm:$0xff] (!%p762_p4)  ;;  %v366_v25 = vld [vmem:[#allocation10 + $0xc8] sm:$0xff] (!%p762_p4) }
  0xa9   : > { %v340_v26 = vld [vmem:[%s286_s27 + $0x8] sm:$0xff] (!%p762_p4)  ;;  %v824_v27 = vpack.c.bf16 (!%p762_p4), %v348_v23, %v347_v22  ;;  %v826_v28 = vpack.c.bf16 (!%p762_p4), %v366_v25, %v365_v24  ;;  %v349_v29 = vld [vmem:[#allocation10 + $0x40] sm:$0xff] (!%p762_p4)  ;;  %v367_v31 = vld [vmem:[#allocation10 + $0xd0] sm:$0xff] (!%p762_p4)  ;;  %s763_s1 = sshll.u32 (!%p762_p4), %s1633_s10, 3 }
  0xaa   : > { %437 = vmatprep.mubr.f32.mxu0 (!%p762_p4), %v340_v26  ;;  %v350_v30 = vld [vmem:[#allocation10 + $0x48] sm:$0xff] (!%p762_p4)  ;;  %v368_v32 = vld [vmem:[#allocation10 + $0xd8] sm:$0xff] (!%p762_p4)  ;;  %v351_v35 = vld [vmem:[#allocation10 + $0x50] sm:$0xff] (!%p762_p4)  ;;  %s444_s17 = scalar_lea.vmem (!%p762_p4), [#allocation2], %s763_s1 }
  0xab   : > { %817 = vmatpush3.bf16.msra.mxu0 %v816_v14  ;;  %v828_v33 = vpack.c.bf16 %v350_v30, %v349_v29  ;;  %v830_v34 = vpack.c.bf16 %v368_v32, %v367_v31  ;;  %v352_v36 = vld [vmem:[#allocation10 + $0x58] sm:$0xff]  ;;  %v369_v37 = vld [vmem:[#allocation10 + $0xe0] sm:$0xff]  ;;  %v370_v38 = vld [vmem:[#allocation10 + $0xe8] sm:$0xff] }
  0xac   : > { %819 = vmatprep.subr.bf16.mxu0 %v818_v15  ;;  %v832_v39 = vpack.c.bf16 %v352_v36, %v351_v35  ;;  %v834_v40 = vpack.c.bf16 %v370_v38, %v369_v37  ;;  %v353_v41 = vld [vmem:[#allocation10 + $0x60] sm:$0xff]  ;;  %v354_v42 = vld [vmem:[#allocation10 + $0x68] sm:$0xff]  ;;  %v371_v43 = vld [vmem:[#allocation10 + $0xf0] sm:$0xff] }
  0xad   : > { %v372_v44 = vld [vmem:[#allocation10 + $0xf8] sm:$0xff]  ;;  %v836_v45 = vpack.c.bf16 %v354_v42, %v353_v41  ;;  %v355_v47 = vld [vmem:[#allocation10 + $0x70] sm:$0xff] }
  0xae   : > { %v838_v46 = vpack.c.bf16 %v372_v44, %v371_v43  ;;  %v356_v48 = vld [vmem:[#allocation10 + $0x78] sm:$0xff]  ;;  %v339_v50 = vld [vmem:[%s286_s27] sm:$0xff] }
  0xaf   : > { %821 = vmatpush3.bf16.msra.mxu0 %v820_v20  ;;  %v840_v49 = vpack.c.bf16 %v356_v48, %v355_v47  ;;  %v446_v0 = vld [vmem:[#allocation3] sm:$0x1]  ;;  %v455_v3 = vld [vmem:[#allocation4] sm:$0x1] }
  0xb0   : > { %823 = vmatprep.subr.bf16.mxu0 %v822_v21 }
  0xb3   : > { %825 = vmatpush3.bf16.msra.mxu0 %v824_v27 }
  0xb4   : > { %827 = vmatprep.subr.bf16.mxu0 %v826_v28 }
  0xb7   : > { %829 = vmatpush3.bf16.msra.mxu0 %v828_v33 }
  0xb8   : > { %831 = vmatprep.subr.bf16.mxu0 %v830_v34 }
  0xbb   : > { %833 = vmatpush3.bf16.msra.mxu0 %v832_v39 }
  0xbc   : > { %835 = vmatprep.subr.bf16.mxu0 %v834_v40 }
  0xbf   : > { %837 = vmatpush3.bf16.msra.mxu0 %v836_v45 }
  0xc0   : > { %839 = vmatprep.subr.bf16.mxu0 %v838_v46 }
  0xc3   : > { %841 = vmatpush3.bf16.msra.mxu0 %v840_v49 }
  0xc6   : > { %438 = vmatmul.mubr.f32.vlgmr.msra.gmra.mrb[0].mxu0 %v339_v50 }
 0x199   : > { %v807_v51 = vpop.f32.mrb[0].mxu0 }
 0x19a   : > { %v808_v52 = vpop.f32.mrb[1].mxu0 }
 0x19b   : > { %v809_v53 = vadd.f32 %v808_v52, %v807_v51 }
 0x19d   : > { %445 = vst [vmem:[%s444_s17] sm:$0xff] %v809_v53  ;;  %v447_v54 = vrot.slane %v809_v53, 4  ;;  %v456_v55 = vmul.f32 %v809_v53, %v809_v53 }
 0x19f   : > { %v448_v56 = vadd.f32 %v809_v53, %v447_v54  ;;  %v457_v57 = vrot.slane %v456_v55, 4 }
 0x1a1   : > { %v449_v58 = vrot.slane %v448_v56, 2  ;;  %v458_v59 = vadd.f32 %v457_v57, %v456_v55 }
 0x1a3   : > { %v450_v60 = vadd.f32 %v449_v58, %v448_v56  ;;  %v459_v61 = vrot.slane %v458_v59, 2 }
 0x1a5   : > { %v451_v62 = vrot.slane %v450_v60, 1  ;;  %v460_v63 = vadd.f32 %v459_v61, %v458_v59 }
 0x1a7   : > { %v452_v1 = vadd.f32 %v451_v62, %v450_v60  ;;  %v461_v2 = vrot.slane %v460_v63, 1 }
 0x1a9   : > { %v453_v4 = vadd.f32 %v452_v1, %v446_v0  ;;  %v462_v5 = vadd.f32 %v461_v2, %v460_v63 }
 0x1ab   : > { %454 = vst [vmem:[#allocation3] sm:$0x1] %v453_v4  ;;  %v463_v6 = vadd.f32 %v462_v5, %v455_v3 }
 0x1ad   : > { %464 = vst [vmem:[#allocation4] sm:$0x1] %v463_v6 }
 0x1ae PF: > { %p465_p6 = scmp.eq.s32.totalorder %s1205_s28, 1 }
 0x1b0   : > { %p466_p10 = pnand %p465_p6, %p329_p1 }
 0x1b1   : > { %s1635_s19 = sld [smem:[#allocation25_spill]] (!%p466_p10)  ;;  %s1636_s12 = sld [smem:[#allocation26_spill]] (!%p466_p10) }
 0x1b2   : > { %469 = sbr.rel (%p466_p10) target bundleno = 463 (0x1cf), region = 68  ;;  %v470_v7 = vld [vmem:[#allocation3] sm:$0x1] (!%p466_p10) }
 0x1b3   : > { %v471_v9 = vmul.f32 (!%p466_p10), 0.03125, %v470_v7 }
 0x1b4   : > { %v472_v8 = vld [vmem:[#allocation4] sm:$0x1] (!%p466_p10) }
 0x1b5   : > { %v473_v10 = vmul.f32 (!%p466_p10), 0.03125, %v472_v8  ;;  %v474_v11 = vmul.f32 (!%p466_p10), %v471_v9, %v471_v9 }
 0x1b7   : > { %v475_v12 = vsub.f32 (!%p466_p10), %v473_v10, %v474_v11  ;;  %v477_v15 = vld [vmem:[%s1635_s19] sm:$0x1] (!%p466_p10) }
 0x1b8   : > { %v482_v18 = vld [vmem:[%s1636_s12] sm:$0x1] (!%p466_p10) }
 0x1b9   : > { %v476_v13 = vmax.f32 %v475_v12, 0.0 }
 0x1bb   : > { %v478_v14 = vadd.f32 1e-05, %v476_v13 }
 0x1bd   : > { %1003 = vrsqrt.f32 %v478_v14 }
 0x1c7   : > { %v1004_v16 = vpop.eup %1003 }
 0x1c8   : > { %v480_v17 = vmul.f32 %v1004_v16, %v477_v15 }
 0x1ca   : > { %481 = vst [vmem:[#allocation5] sm:$0x1] %v480_v17  ;;  %v483_v19 = vmul.f32 %v480_v17, %v471_v9 }
 0x1cc   : > { %v484_v20 = vsub.f32 %v482_v18, %v483_v19 }
 0x1ce   : > { %485 = vst [vmem:[#allocation6] sm:$0x1] %v484_v20 }
 0x1cf PF: > { %p764_p11 = scmp.ne.s32.totalorder %s1205_s28, 1 }
 0x1d0   : > { %v510_v21 = vld [vmem:[#allocation12 + $0x8] sm:$0xff] (!%p764_p11)  ;;  %v512_v22 = vld [vmem:[#allocation12 + $0x18] sm:$0xff] (!%p764_p11)  ;;  %v509_v23 = vld [vmem:[#allocation12] sm:$0xff] (!%p764_p11)  ;;  %v1227_v28 = vmov (!%p764_p11), 0.0   ;;  %s1637_s20 = sld [smem:[#allocation18_spill]] (!%p764_p11)  ;;  %v543_v12 = vlaneseq (!%p764_p11)  ;;  %s1638_s27 = sld [smem:[#allocation27_spill]] (!%p764_p11) }
 0x1d1   : > { %488 = sbr.rel (%p764_p11) target bundleno = 715 (0x2cb), region = 72  ;;  %v842_v24 = vpack.c.bf16 (!%p764_p11), %v512_v22, %v510_v21  ;;  %v511_v25 = vld [vmem:[#allocation12 + $0x10] sm:$0xff] (!%p764_p11)  ;;  %v514_v26 = vld [vmem:[#allocation12 + $0x28] sm:$0xff] (!%p764_p11)  ;;  %v516_v27 = vld [vmem:[#allocation12 + $0x38] sm:$0xff] (!%p764_p11)  ;;  %617 = vmatprep.mubr.f32.mxu0 (!%p764_p11), %v1227_v28 }
 0x1d2   : > { %v844_v29 = vpack.c.bf16 (!%p764_p11), %v511_v25, %v509_v23  ;;  %v846_v30 = vpack.c.bf16 (!%p764_p11), %v516_v27, %v514_v26  ;;  %v513_v31 = vld [vmem:[#allocation12 + $0x20] sm:$0xff] (!%p764_p11)  ;;  %v515_v32 = vld [vmem:[#allocation12 + $0x30] sm:$0xff] (!%p764_p11)  ;;  %v518_v33 = vld [vmem:[#allocation12 + $0x48] sm:$0xff] (!%p764_p11)  ;;  %v544_v13 = vshrl.u32 (!%p764_p11), %v543_v12, 7 }
 0x1d3   : > { %843 = vmatprep.subr.bf16.mxu0 (!%p764_p11), %v842_v24  ;;  %v520_v34 = vld [vmem:[#allocation12 + $0x58] sm:$0xff] (!%p764_p11)  ;;  %v848_v35 = vpack.c.bf16 (!%p764_p11), %v515_v32, %v513_v31  ;;  %v517_v37 = vld [vmem:[#allocation12 + $0x40] sm:$0xff] (!%p764_p11)  ;;  %v519_v38 = vld [vmem:[#allocation12 + $0x50] sm:$0xff] (!%p764_p11) }
 0x1d4   : > { %845 = vmatpush1.bf16.msra.mxu0 (!%p764_p11), %v844_v29  ;;  %v850_v36 = vpack.c.bf16 (!%p764_p11), %v520_v34, %v518_v33  ;;  %v522_v39 = vld [vmem:[#allocation12 + $0x68] sm:$0xff] (!%p764_p11)  ;;  %v524_v40 = vld [vmem:[#allocation12 + $0x78] sm:$0xff] (!%p764_p11)  ;;  %v852_v41 = vpack.c.bf16 (!%p764_p11), %v519_v38, %v517_v37  ;;  %v521_v43 = vld [vmem:[#allocation12 + $0x60] sm:$0xff] (!%p764_p11)  ;;  %v545_v14 = vsub.s32 (!%p764_p11), 0, %v544_v13  ;;  %v549_v16 = vsub.s32 (!%p764_p11), 1, %v544_v13 }
 0x1d5   : > { %847 = vmatprep.subr.bf16.mxu0 (!%p764_p11), %v846_v30  ;;  %v854_v42 = vpack.c.bf16 (!%p764_p11), %v524_v40, %v522_v39  ;;  %v523_v44 = vld [vmem:[#allocation12 + $0x70] sm:$0xff] (!%p764_p11)  ;;  %v526_v45 = vld [vmem:[#allocation12 + $0x88] sm:$0xff] (!%p764_p11)  ;;  %v528_v46 = vld [vmem:[#allocation12 + $0x98] sm:$0xff] (!%p764_p11) }
 0x1d6   : > { %v856_v47 = vpack.c.bf16 (!%p764_p11), %v523_v44, %v521_v43  ;;  %v858_v48 = vpack.c.bf16 (!%p764_p11), %v528_v46, %v526_v45  ;;  %v525_v49 = vld [vmem:[#allocation12 + $0x80] sm:$0xff] (!%p764_p11)  ;;  %v527_v50 = vld [vmem:[#allocation12 + $0x90] sm:$0xff] (!%p764_p11)  ;;  %v530_v51 = vld [vmem:[#allocation12 + $0xa8] sm:$0xff] (!%p764_p11)  ;;  %s765_s13 = sshll.u32 (!%p764_p11), %s1637_s20, 3 }
 0x1d7   : > { %v532_v52 = vld [vmem:[#allocation12 + $0xb8] sm:$0xff] (!%p764_p11)  ;;  %v860_v53 = vpack.c.bf16 (!%p764_p11), %v527_v50, %v525_v49  ;;  %v529_v55 = vld [vmem:[#allocation12 + $0xa0] sm:$0xff] (!%p764_p11)  ;;  %v531_v56 = vld [vmem:[#allocation12 + $0xb0] sm:$0xff] (!%p764_p11)  ;;  %s490_s8 = scalar_lea.vmem (!%p764_p11), [#allocation2], %s765_s13 }
 0x1d8   : > { %849 = vmatpush1.bf16.msra.mxu0 %v848_v35  ;;  %v862_v54 = vpack.c.bf16 %v532_v52, %v530_v51  ;;  %v534_v57 = vld [vmem:[#allocation12 + $0xc8] sm:$0xff]  ;;  %v536_v58 = vld [vmem:[#allocation12 + $0xd8] sm:$0xff]  ;;  %v864_v59 = vpack.c.bf16 %v531_v56, %v529_v55  ;;  %v533_v63 = vld [vmem:[#allocation12 + $0xc0] sm:$0xff] }
 0x1d9   : > { %851 = vmatprep.subr.bf16.mxu0 %v850_v36  ;;  %v491_v60 = vld [vmem:[%s490_s8] sm:$0xff]  ;;  %v866_v62 = vpack.c.bf16 %v536_v58, %v534_v57  ;;  %v535_v0 = vld [vmem:[#allocation12 + $0xd0] sm:$0xff]  ;;  %v538_v1 = vld [vmem:[#allocation12 + $0xe8] sm:$0xff] }
 0x1da   : > { %v766_v61 = vld [vmem:[#allocation5] ss:$0 sm:$0xff]  ;;  %v868_v4 = vpack.c.bf16 %v535_v0, %v533_v63  ;;  %v767_v5 = vld [vmem:[#allocation6] ss:$0 sm:$0xff]  ;;  %v537_v7 = vld [vmem:[#allocation12 + $0xe0] sm:$0xff] }
 0x1db   : > { %v540_v2 = vld [vmem:[#allocation12 + $0xf8] sm:$0xff]  ;;  %v499_v3 = vmul.f32 %v766_v61, %v491_v60  ;;  %v539_v8 = vld [vmem:[#allocation12 + $0xf0] sm:$0xff] }
 0x1dc   : > { %853 = vmatpush1.bf16.msra.mxu0 %v852_v41  ;;  %v870_v6 = vpack.c.bf16 %v540_v2, %v538_v1  ;;  %v872_v10 = vpack.c.bf16 %v539_v8, %v537_v7  ;;  %v541_v15 = vld [vmem:[%s1638_s27] sm:$0x3] }
 0x1dd   : > { %855 = vmatprep.subr.bf16.mxu0 %v854_v42  ;;  %v507_v9 = vadd.f32 %v767_v5, %v499_v3  ;;  %v546_v17 = vrot.slane %v541_v15, %v545_v14  ;;  %v550_v18 = vrot.slane %v541_v15, %v549_v16 }
 0x1df   : > { %v508_v11 = vmax.f32 %v507_v9, 0.0 }
 0x1e0   : > { %857 = vmatpush1.bf16.msra.mxu0 %v856_v47 }
 0x1e1   : > { %859 = vmatprep.subr.bf16.mxu0 %v858_v48 }
 0x1e4   : > { %861 = vmatpush1.bf16.msra.mxu0 %v860_v53 }
 0x1e5   : > { %863 = vmatprep.subr.bf16.mxu0 %v862_v54 }
 0x1e8   : > { %865 = vmatpush1.bf16.msra.mxu0 %v864_v59 }
 0x1e9   : > { %867 = vmatprep.subr.bf16.mxu0 %v866_v62 }
 0x1ec   : > { %869 = vmatpush1.bf16.msra.mxu0 %v868_v4 }
 0x1ed   : > { %871 = vmatprep.subr.bf16.mxu0 %v870_v6 }
 0x1f0   : > { %873 = vmatpush1.bf16.msra.mxu0 %v872_v10 }
 0x1f3   : > { %618 = vmatmul.mubr.f32.vlgmr.msra.gmra.mrb[0].mxu0 %v508_v11 }
 0x2c6   : > { %v619_v19 = vpop.f32.mrb[0].mxu0 }
 0x2c7   : > { %v620_v20 = vadd.f32 %v619_v19, %v546_v17  ;;  %v621_v21 = vpop.f32.mrb[1].mxu0 }
 0x2c8   : > { %v622_v22 = vadd.f32 %v621_v21, %v550_v18 }
 0x2c9   : > { %624 = vst [vmem:[%s1500_s11] sm:$0xff] %v620_v20 }
 0x2ca   : > { %625 = vst [vmem:[%s1500_s11 + $0x8] sm:$0xff] %v622_v22 }
 0x2cb PF: > { %s1639_s14 = sld [smem:[#allocation18_spill]]  ;;  %s1640_s6 = sld [smem:[#allocation21_spill]] }
 0x2cc   : > { %s642_s1 = sshll.u32 %s1500_s11, 4  ;;  %s1641_s30 = sld [smem:[#allocation28_spill]]  ;;  %s1527_s1 = int_to_ptr.vmem [resolvable:$true] %s642_s1 }
 0x2cd   : > { %s627_s18 = scalar_lea.sflag [#allocation9], %s320_s16  ;;  %s1091_s12 = scalar_lea.vmem %s1527_s1, 256 }
 0x2ce   : > { %p1092_p5 = scmp.ne.s32.totalorder %s1527_s1, %s1091_s12  ;;  %s1228_s20 = smov [#allocation13]  }
 0x2d1   : > { %s634_s10 = smul.u32 %s1639_s14, %s1205_s28  ;;  %p1643_p8 = scmp.ne.s32.totalorder %s1640_s6, 0 }
 0x2d2   : > { %s1642_s19 = smov %s1641_s30  ;;  %s1095_s28 = sshll.u32 %s1228_s20, 4  ;;  %s1096_s28 = int_to_ptr.vmem [resolvable:$false] %s1095_s28 }
 0x2d3   : > { %s774_s17 = sshll.u32 %s634_s10, 8  ;;  %p1093_p12 = pnand %p1092_p5, %p1643_p8 }
 0x2d4   : > { %s640_s15 = scalar_lea.hbm %s1641_s30, %s774_s17  ;;  %s1097_s11 = scalar_lea.vmem %s1096_s28, 512 }
 0x2d5   : > { %p1094_p2 = pneg %p1093_p12  ;;  %p1098_p9 = scmp.lt.s32.totalorder %s1527_s1, %s1096_s28 }
 0x2d6   : > { %p1099_p7 = scmp.lt.s32.totalorder %s1097_s11, %s1091_s12 }
 0x2d8   : > { %p1100_p0 = por %p1099_p7, %p1098_p9 }
 0x2da   : > { %p1101_p3 = pnand %p1100_p0, %p1094_p2 }
 0x2dc   : > { %1104 = shalt.err (!%p1101_p3)
}
 0x2dd   : > { %s1105_s13 = scalar_lea.hbm %s640_s15, 256  ;;  %s1109_s9 = scalar_lea.hbm %s1642_s19, 1024 }
 0x2de   : > { %p1106_p1 = scmp.ne.s32.totalorder %s640_s15, %s1105_s13  ;;  %p1110_p6 = scmp.lt.u32.totalorder %s640_s15, %s1642_s19 }
 0x2df   : > { %p1111_p10 = scmp.lt.u32.totalorder %s1109_s9, %s1105_s13  ;;  %p1113_p5 = scmp.lt.u32.totalorder %s1105_s13, %s640_s15 }
 0x2e0   : > { %p1107_p13 = pnand %p1106_p1, %p1643_p8 }
 0x2e1   : > { %p1112_p11 = por %p1111_p10, %p1110_p6 }
 0x2e2   : > { %p1108_p4 = pneg %p1107_p13 }
 0x2e3   : > { %p1114_p12 = por %p1113_p5, %p1112_p11 }
 0x2e5   : > { %p1115_p2 = pnand %p1114_p12, %p1108_p4 }
 0x2e7   : > { %1118 = shalt.err (!%p1115_p2)
}
 0x2e8   : > { %884 = dma.vmem_to_hbm [thread:$0]  (%p1643_p8), %s1527_s1, 256, %s640_s15, %s627_s18  }
 0x2e9 PF: > { %s1644_s14 = sld [smem:[#allocation17_spill]]  ;;  %s1645_s10 = sld [smem:[#allocation22_spill]] }
 0x2ea   : > { %p906_p9 = scmp.ge.s32.totalorder %s1217_s7, 2 }
 0x2ef   : > { %s654_s17 = sand.u32 1, %s1644_s14   ;;  %p1646_p7 = scmp.ne.s32.totalorder %s1645_s10, 0 }
 0x2f0   : > { %s655_s2 = scalar_lea.sflag [#allocation9], %s654_s17 }
 0x2f1   : > { %p898_p0 = pnand %p906_p9, %p1646_p7 }
 0x2f3   : > { %1172 = dma.done.wait (!%p898_p0), %s655_s2, 256  }
 0x2f4   : > { %1174 = vsyncadd (!%p898_p0), %s655_s2, 4294967040  ;;  %s23_s7 = sadd.s32 1, %s1217_s7   ;;  %s1647_s27 = sld [smem:[#allocation19_spill]] }
 0x2f5   : > { %p20_p3 = scmp.ge.s32.totalorder %s23_s7, 10   ;;  %s1648_s28 = sld [smem:[#allocation20_spill]] }
 0x2f6   : > { %s1649_s6 = smov %s1660_s24  ;;  %s1650_s1 = smov %s1664_s21 }
 0x2f7   : > { %s1651_s21 = smov %s1181_s22  ;;  %s1652_s22 = smov %s1185_s23 }
 0x2f8   : > { %s1653_s23 = smov %s1437_s3  ;;  %s1654_s24 = smov %s1193_s25 }
 0x2f9   : > { %s1655_s25 = smov %s1197_s26  ;;  %s1656_s26 = smov %s1434_s4 }
 0x2fa   : > { %s1657_s29 = smov %s1649_s6  ;;  %s1658_s30 = smov %s1650_s1 }
 0x2fb   :  { %22 = sbr.rel (!%p20_p3) target bundleno = 17 (0x11), region = 115 }
 0x302   :  { %660 = vsyncpa [#allocation8], 1 }
 0x303   :  { %662 = vsyncpa [#allocation8 + $0x1], 1 }
 0x304   :  { %663 = vsyncpa [#allocation11], 1 }
 0x305   :  { %664 = vsyncpa [#allocation9], 1 }
 0x306   :  { %666 = vsyncpa [#allocation9 + $0x1], 1 }

// kernel: tpu_custom_call.1
= control target key start
LH: loop header
LB: loop body
LE: loop exit
PB: predicated region body
PF: predicated region fallthrough
CT: control target
= control target key end

     0   :  { %s1587_s0 = inlined_call_operand.hbm [shape: f32[32,256], index: 0, kind: input, shape index: {}]   ;;  %s1588_s1 = inlined_call_operand.hbm [shape: f32[256,128], index: 1, kind: input, shape index: {}]   ;;  %s1589_s2 = inlined_call_operand.hbm [shape: f32[128,256], index: 2, kind: input, shape index: {}]   ;;  %s1590_s3 = inlined_call_operand.vmem [shape: f32[1,128], index: 3, kind: input, shape index: {}]   ;;  %s1591_s4 = inlined_call_operand.vmem [shape: f32[1,128], index: 4, kind: input, shape index: {}]   ;;  %s1592_s5 = inlined_call_operand.vmem [shape: f32[1,256], index: 5, kind: input, shape index: {}]   ;;  %s1593_s6 = inlined_call_operand.hbm [shape: f32[32,256], index: 6, kind: output, shape index: {}]  }
   0x1   :  { %1607 = sst [smem:[#allocation23_spill]] %s1588_s1 }
   0x2   :  { %1608 = sst [smem:[#allocation24_spill]] %s1589_s2 }
   0x3   :  { %1609 = sst [smem:[#allocation25_spill]] %s1590_s3 }
   0x4   :  { %1610 = sst [smem:[#allocation26_spill]] %s1591_s4 }
   0x5   :  { %1611 = sst [smem:[#allocation27_spill]] %s1592_s5 }
   0x6   :  { %1612 = sst [smem:[#allocation28_spill]] %s1593_s6 }
   0x7   :  { %11 = vsyncpa [#allocation8], 0 }
   0x8   :  { %13 = vsyncpa [#allocation8 + $0x1], 0 }
   0x9   :  { %14 = vsyncpa [#allocation11], 0 }
   0xa   :  { %15 = vsyncpa [#allocation9], 0 }
   0xb   :  { %17 = vsyncpa [#allocation9 + $0x1], 0  ;;  %s1264_s21 = smov 0   ;;  %s1266_s22 = smov 0  }
   0xc   :  { %s1268_s23 = smov 0   ;;  %s1270_s24 = smov 0  }
   0xd   :  { %s1272_s25 = smov 0   ;;  %s1274_s26 = smov 0  }
   0xe   :  { %s1276_s27 = smov 0   ;;  %s1278_s28 = smov 0  }
   0xf   :  { %s1280_s29 = smov 0   ;;  %s1282_s30 = smov 0  }
  0x10   :  { %s1284_s7 = smov 0  }
  0x11 LB: > { %1613 = sst [smem:[#allocation17_spill]] %s1177_s21  ;;  %s748_s8 = sadd.s32 4294967295, %s1217_s7   ;;  %s1217_s7 = sphi %s1284_s7, %s23_s7   ;;  %s1213_s30 = sphi %s1282_s30, %s1658_s30   ;;  %s1209_s29 = sphi %s1280_s29, %s1657_s29   ;;  %s1205_s28 = sphi %s1278_s28, %s1648_s28   ;;  %s1201_s27 = sphi %s1276_s27, %s1647_s27   ;;  %s1197_s26 = sphi %s1274_s26, %s1656_s26   ;;  %s1193_s25 = sphi %s1272_s25, %s1655_s25   ;;  %s1189_s24 = sphi %s1270_s24, %s1654_s24   ;;  %s1185_s23 = sphi %s1268_s23, %s1653_s23   ;;  %s1181_s22 = sphi %s1266_s22, %s1652_s22   ;;  %s1177_s21 = sphi %s1264_s21, %s1651_s21  }
  0x12   : > { %1614 = sst [smem:[#allocation18_spill]] %s1201_s27  ;;  %s749_s9 = sadd.s32 4294967294, %s1217_s7  }
  0x13   : > { %1615 = sst [smem:[#allocation19_spill]] %s1209_s29  ;;  %p63_p0 = scmp.ne.s32.totalorder %s1193_s25, %s1189_s24 }
  0x14   : > { %1616 = sst [smem:[#allocation20_spill]] %s1213_s30  ;;  %p1320_p1 = scmp.eq.s32.totalorder %s748_s8, 0 }
  0x15   : > { %p193_p2 = scmp.ne.s32.totalorder %s1185_s23, %s1181_s22  ;;  %p194_p3 = scmp.eq.s32.totalorder %s748_s8, 7 }
  0x16   : > { %s1617_s10 = scalar_select %p1320_p1, 1, 0 }
  0x17   : > { %p1328_p4 = por %p1320_p1, %p63_p0  ;;  %p199_p5 = scmp.ne.s32.totalorder %s1181_s22, %s1177_s21 }
  0x18   : > { %p1334_p6 = por %p194_p3, %p193_p2  ;;  %p200_p7 = scmp.eq.s32.totalorder %s749_s9, 7 }
  0x19   : > { %s1618_s11 = scalar_select %p1328_p4, 1, 0 }
  0x1a   : > { %s1619_s12 = scalar_select %p1334_p6, 1, 0 }
  0x1b   : > { %p750_p8 = scmp.ge.s32.totalorder %s1217_s7, 1  ;;  %p207_p9 = scmp.lt.s32.totalorder %s1217_s7, 9 }
  0x1c   : > { %1620 = sst [smem:[#allocation21_spill]] %s1619_s12  ;;  %p1340_p10 = por %p200_p7, %p199_p5 }
  0x1d   : > { %p1344_p11 = pnand %p750_p8, %p207_p9  ;;  %s1219_s15 = smov [#allocation10]  }
  0x1e   : > { %s1621_s13 = scalar_select %p1340_p10, 1, 0 }
  0x1f   : > { %s1623_s14 = scalar_select %p1344_p11, 1, 0 }
  0x20   : > { %1622 = sst [smem:[#allocation22_spill]] %s1621_s13  ;;  %s219_s16 = sshll.u32 %s1219_s15, 4  ;;  %s220_s16 = int_to_ptr.vmem [resolvable:$true] %s219_s16 }
  0x21   : > { %p886_p12 = pneg %p1344_p11  ;;  %s1220_s18 = smov [#allocation12]  }
  0x22   : > { %s232_s19 = sshll.u32 %s1220_s18, 4  ;;  %s1625_s1 = sld [smem:[#allocation23_spill]]  ;;  %s1356_s19 = int_to_ptr.vmem [resolvable:$true] %s232_s19 }
  0x23   : > { %p1352_p13 = pnand %p886_p12, %p1320_p1 }
  0x25   : > { %p1007_p2 = pneg %p1352_p13 }
  0x28   : > { %s1005_s8 = scalar_lea.hbm %s1625_s1, 4096 }
  0x29   : > { %p1006_p0 = scmp.ne.s32.totalorder %s1625_s1, %s1005_s8  ;;  %p1012_p7 = scmp.lt.u32.totalorder %s1005_s8, %s1625_s1 }
  0x2b   : > { %p1008_p3 = pnand %p1007_p2, %p1006_p0 }
  0x2d   : > { %p1009_p5 = pneg %p1008_p3 }
  0x2f   : > { %p1014_p8 = pnand %p1012_p7, %p1009_p5 }
  0x31   : > { %1017 = shalt.err (!%p1014_p8)
}
  0x32   : > { %s1018_s18 = scalar_lea.vmem %s220_s16, 4096  ;;  %p1026_p6 = scmp.lt.s32.totalorder %s220_s16, %s220_s16 }
  0x33   : > { %p1019_p9 = scmp.ne.s32.totalorder %s220_s16, %s1018_s18  ;;  %p1027_p1 = scmp.lt.s32.totalorder %s1018_s18, %s1018_s18 }
  0x35   : > { %p1021_p12 = pnand %p1019_p9, %p1007_p2  ;;  %p1028_p4 = por %p1027_p1, %p1026_p6 }
  0x37   : > { %p1022_p10 = pneg %p1021_p12 }
  0x39   : > { %p1029_p11 = pnand %p1028_p4, %p1022_p10 }
  0x3b   : > { %1032 = shalt.err (!%p1029_p11)
}
  0x3c   : > { %s1221_s20 = smov 128   ;;  %s1222_s24 = smov 8  }
  0x3d   : > { %889 = dma.hbm_to_vmem [thread:$0]  (!%p1352_p13), %s1625_s1, 4096, %s220_s16, [#allocation11], %s1221_s20, %s1221_s20, %s1222_s24  }
  0x3e   : > { %s1626_s2 = sld [smem:[#allocation24_spill]] }
  0x44   : > { %s1033_s15 = scalar_lea.hbm %s1626_s2, 4096 }
  0x45   : > { %p1034_p0 = scmp.ne.s32.totalorder %s1626_s2, %s1033_s15  ;;  %p1040_p6 = scmp.lt.u32.totalorder %s1033_s15, %s1626_s2 }
  0x47   : > { %p1036_p1 = pnand %p1034_p0, %p1007_p2 }
  0x49   : > { %p1037_p4 = pneg %p1036_p1 }
  0x4b   : > { %p1042_p10 = pnand %p1040_p6, %p1037_p4 }
  0x4d   : > { %1045 = shalt.err (!%p1042_p10)
}
  0x4e   : > { %s1046_s16 = scalar_lea.vmem %s1356_s19, 4096  ;;  %p1054_p7 = scmp.lt.s32.totalorder %s1356_s19, %s1356_s19 }
  0x4f   : > { %p1047_p11 = scmp.ne.s32.totalorder %s1356_s19, %s1046_s16  ;;  %p1055_p8 = scmp.lt.s32.totalorder %s1046_s16, %s1046_s16 }
  0x51   : > { %p1049_p3 = pnand %p1047_p11, %p1007_p2  ;;  %p1056_p9 = por %p1055_p8, %p1054_p7 }
  0x53   : > { %p1050_p5 = pneg %p1049_p3 }
  0x55   : > { %p1057_p12 = pnand %p1056_p9, %p1050_p5 }
  0x57   : > { %1060 = shalt.err (!%p1057_p12)
}
  0x58   : > { %s1223_s5 = smov 256   ;;  %s1224_s6 = smov 16  }
  0x59   : > { %892 = dma.hbm_to_vmem [thread:$0]  (!%p1352_p13), %s1626_s2, 4096, %s1356_s19, [#allocation11], %s1223_s5, %s1223_s5, %s1224_s6  }
  0x5a   : > { %s32_s24 = sadd.s32 1, %s1209_s29  ;;  %s35_s21 = sadd.s32 1, %s1213_s30 }
  0x5b   : > { %p33_p2 = scmp.ge.s32.totalorder %s32_s24, 4  ;;  %s39_s13 = ssub.s32 1, %s1213_s30 }
  0x5c   : > { %s41_s8 = smul.u32 3, %s1213_s30  ;;  %s50_s17 = sadd.s32 1, %s1197_s26 }
  0x5d   : > { %s1660_s24 = smov (%p33_p2, %s32_s24), 0  ;;  %s1662_s21 = smov (!%p33_p2, %s35_s21), %s1213_s30 }
  0x5e   : > { %s40_s9 = smul.u32 %s1209_s29, %s39_s13  ;;  %p37_p0 = scmp.ge.s32.totalorder %s1662_s21, 2 }
  0x5f   : > { %p57_p1 = scmp.ne.s32.totalorder %s1197_s26, %s1193_s25  ;;  %p58_p13 = scmp.eq.s32.totalorder %s1217_s7, 0 }
  0x60   : > { %s42_s19 = sadd.s32 %s41_s8, %s40_s9  ;;  %s1664_s21 = smov (%p37_p0, %s1662_s21), 0 }
  0x61   : > { %p1419_p4 = por %p58_p13, %p57_p1  ;;  %s178_s18 = smul.u32 %s1209_s29, %s1213_s30 }
  0x62   : > { %s43_s16 = ssub.s32 1, %s1664_s21  ;;  %s45_s5 = smul.u32 3, %s1664_s21 }
  0x63   : > { %s44_s6 = smul.u32 %s43_s16, %s1660_s24  ;;  %s183_s12 = sadd.s32 1, %s1185_s23 }
  0x64   : > { %s179_s20 = smul.u32 %s1664_s21, %s1660_s24  ;;  %p903_p6 = scmp.lt.s32.totalorder %s1217_s7, 8 }
  0x65   : > { %s46_s13 = sadd.s32 %s45_s5, %s44_s6  ;;  %s255_s8 = sand.u32 1, %s1197_s26  }
  0x66   : > { %s47_s9 = ssub.s32 %s42_s19, %s46_s13  ;;  %s180_s1 = ssub.s32 %s178_s18, %s179_s20 }
  0x67   : > { %p48_p10 = scmp.eq.s32.totalorder %s47_s9, 0  ;;  %p181_p11 = scmp.eq.s32.totalorder %s180_s1, 0 }
  0x68   : > { %s754_s2 = sshll.u32 %s255_s8, 4  ;;  %s773_s30 = sshll.u32 %s42_s19, 8 }
  0x69   : > { %s1434_s4 = scalar_select %p48_p10, %s1197_s26, %s50_s17  }
  0x6a   : > { %s1437_s3 = scalar_select %p181_p11, %s1185_s23, %s183_s12  }
  0x6b   : > { %s1442_s16 = scalar_lea.hbm %s1587_s0, %s773_s30  ;;  %s259_s5 = scalar_lea.vmem [#allocation7], %s754_s2 }
  0x6c   : > { %s271_s6 = sshll.u32 %s259_s5, 4  ;;  %p1450_p3 = pnand %p903_p6, %p1419_p4  ;;  %s1444_s6 = int_to_ptr.vmem [resolvable:$true] %s271_s6 }
  0x6d   : > { %s256_s17 = scalar_lea.sflag [#allocation8], %s255_s8  ;;  %s1061_s27 = scalar_lea.hbm %s1442_s16, 256 }
  0x6e   : > { %p1062_p5 = scmp.ne.s32.totalorder %s1442_s16, %s1061_s27  ;;  %p1063_p7 = pneg %p1450_p3 }
  0x6f   : > { %s1066_s30 = scalar_lea.hbm %s1587_s0, 1024  ;;  %p1067_p12 = scmp.lt.u32.totalorder %s1442_s16, %s1587_s0 }
  0x70   : > { %p1064_p8 = pnand %p1063_p7, %p1062_p5  ;;  %p1068_p2 = scmp.lt.u32.totalorder %s1066_s30, %s1061_s27 }
  0x71   : > { %p1070_p1 = scmp.lt.u32.totalorder %s1061_s27, %s1442_s16 }
  0x72   : > { %p1065_p9 = pneg %p1064_p8  ;;  %p1069_p0 = por %p1068_p2, %p1067_p12 }
  0x74   : > { %p1071_p13 = por %p1070_p1, %p1069_p0 }
  0x76   : > { %p1072_p4 = pnand %p1071_p13, %p1065_p9 }
  0x78   : > { %1075 = shalt.err (!%p1072_p4)
}
  0x79   : > { %s1076_s18 = scalar_lea.vmem %s1444_s6, 256  ;;  %s1225_s12 = smov [#allocation7]  }
  0x7a   : > { %p1077_p6 = scmp.ne.s32.totalorder %s1444_s6, %s1076_s18  ;;  %s1081_s20 = sshll.u32 %s1225_s12, 4  ;;  %s1082_s20 = int_to_ptr.vmem [resolvable:$false] %s1081_s20 }
  0x7b   : > { %s1083_s13 = scalar_lea.vmem %s1082_s20, 512  ;;  %p1084_p5 = scmp.lt.s32.totalorder %s1444_s6, %s1082_s20 }
  0x7c   : > { %p1079_p10 = pnand %p1077_p6, %p1063_p7  ;;  %p1085_p8 = scmp.lt.s32.totalorder %s1083_s13, %s1076_s18 }
  0x7e   : > { %p1080_p11 = pneg %p1079_p10  ;;  %p1086_p12 = por %p1085_p8, %p1084_p5 }
  0x80   : > { %p1087_p2 = pnand %p1086_p12, %p1080_p11 }
  0x82   : > { %1090 = shalt.err (!%p1087_p2)
}
  0x83   : > { %896 = dma.hbm_to_vmem [thread:$0]  (!%p1450_p3), %s1442_s16, 256, %s1444_s6, %s256_s17  }
  0x84   : > { %p1629_p9 = scmp.ne.s32.totalorder %s1623_s14, 0 }
  0x85   : > { %s282_s8 = sand.u32 (!%p1629_p9), 1, %s1193_s25   ;;  %p1630_p7 = scmp.ne.s32.totalorder (!%p1629_p9), %s1618_s11, 0 }
  0x86   : > { %280 = sbr.rel (%p1629_p9) target bundleno = 745 (0x2e9), region = 44  ;;  %s1482_s9 = sshll.u32 (!%p1629_p9), %s282_s8, 4 }
  0x87   : > { %s283_s5 = scalar_lea.sflag (!%p1629_p9), [#allocation8], %s282_s8  ;;  %s286_s27 = scalar_lea.vmem (!%p1629_p9), [#allocation7], %s1482_s9 }
  0x8d   : > { %1164 = dma.done.wait (%p1630_p7), %s283_s5, 256  }
  0x8e   : > { %1166 = vsyncadd (%p1630_p7), %s283_s5, 4294967040  ;;  %p1631_p0 = scmp.ne.s32.totalorder %s1617_s10, 0 }
  0x90   : > { %1168 = dma.done.wait (%p1631_p0), [#allocation11], 8192  }
  0x91   : > { %1170 = vsyncadd (%p1631_p0), [#allocation11], 4294959104  ;;  %s1632_s14 = sld [smem:[#allocation18_spill]]  ;;  %s320_s16 = sand.u32 1, %s1181_s22  }
  0x92   : > { %p328_p3 = scmp.eq.s32.totalorder %s1205_s28, 0  ;;  %s761_s6 = sshll.u32 %s320_s16, 4 }
  0x93   : > { %s1500_s11 = scalar_lea.vmem [#allocation13], %s761_s6 }
  0x97   : > { %p329_p1 = scmp.eq.s32.totalorder %s1632_s14, 0 }
  0x99   : > { %p330_p13 = pnand %p329_p1, %p328_p3 }
  0x9a   : > { %v1226_v0 = vmov (!%p330_p13), 0.0  }
  0x9b   : > { %333 = sbr.rel (%p330_p13) target bundleno = 162 (0xa2), region = 60  ;;  %334 = vst [vmem:[#allocation3] sm:$0x1] (!%p330_p13), %v1226_v0  ;;  %335 = vst [vmem:[#allocation4] sm:$0x1] (!%p330_p13), %v1226_v0 }
  0xa2 PF: > { %p762_p4 = scmp.ne.s32.totalorder %s1205_s28, 0 }
  0xa3   : > { %v357_v1 = vld [vmem:[#allocation10 + $0x80] sm:$0xff] (!%p762_p4)  ;;  %v358_v2 = vld [vmem:[#allocation10 + $0x88] sm:$0xff] (!%p762_p4)  ;;  %v359_v6 = vld [vmem:[#allocation10 + $0x90] sm:$0xff] (!%p762_p4)  ;;  %s1633_s10 = sld [smem:[#allocation18_spill]] (!%p762_p4) }
  0xa4   : > { %338 = sbr.rel (%p762_p4) target bundleno = 430 (0x1ae), region = 64  ;;  %v341_v3 = vld [vmem:[#allocation10] sm:$0xff] (!%p762_p4)  ;;  %v810_v4 = vpack.c.bf16 (!%p762_p4), %v358_v2, %v357_v1  ;;  %v342_v5 = vld [vmem:[#allocation10 + $0x8] sm:$0xff] (!%p762_p4)  ;;  %v360_v7 = vld [vmem:[#allocation10 + $0x98] sm:$0xff] (!%p762_p4) }
  0xa5   : > { %v812_v8 = vpack.c.bf16 (!%p762_p4), %v342_v5, %v341_v3  ;;  %v814_v9 = vpack.c.bf16 (!%p762_p4), %v360_v7, %v359_v6  ;;  %v343_v10 = vld [vmem:[#allocation10 + $0x10] sm:$0xff] (!%p762_p4)  ;;  %v344_v11 = vld [vmem:[#allocation10 + $0x18] sm:$0xff] (!%p762_p4)  ;;  %v361_v12 = vld [vmem:[#allocation10 + $0xa0] sm:$0xff] (!%p762_p4) }
  0xa6   : > { %811 = vmatprep.subr.bf16.mxu0 (!%p762_p4), %v810_v4  ;;  %v362_v13 = vld [vmem:[#allocation10 + $0xa8] sm:$0xff] (!%p762_p4)  ;;  %v816_v14 = vpack.c.bf16 (!%p762_p4), %v344_v11, %v343_v10  ;;  %v345_v16 = vld [vmem:[#allocation10 + $0x20] sm:$0xff] (!%p762_p4)  ;;  %v363_v18 = vld [vmem:[#allocation10 + $0xb0] sm:$0xff] (!%p762_p4) }
  0xa7   : > { %813 = vmatpush3.bf16.msra.mxu0 (!%p762_p4), %v812_v8  ;;  %v818_v15 = vpack.c.bf16 (!%p762_p4), %v362_v13, %v361_v12  ;;  %v346_v17 = vld [vmem:[#allocation10 + $0x28] sm:$0xff] (!%p762_p4)  ;;  %v364_v19 = vld [vmem:[#allocation10 + $0xb8] sm:$0xff] (!%p762_p4)  ;;  %v347_v22 = vld [vmem:[#allocation10 + $0x30] sm:$0xff] (!%p762_p4) }
  0xa8   : > { %815 = vmatprep.subr.bf16.mxu0 (!%p762_p4), %v814_v9  ;;  %v820_v20 = vpack.c.bf16 (!%p762_p4), %v346_v17, %v345_v16  ;;  %v822_v21 = vpack.c.bf16 (!%p762_p4), %v364_v19, %v363_v18  ;;  %v348_v23 = vld [vmem:[#allocation10 + $0x38] sm:$0xff] (!%p762_p4)  ;;  %v365_v24 = vld [vmem:[#allocation10 + $0xc0] sm:$0xff] (!%p762_p4)  ;;  %v366_v25 = vld [vmem:[#allocation10 + $0xc8] sm:$0xff] (!%p762_p4) }
  0xa9   : > { %v340_v26 = vld [vmem:[%s286_s27 + $0x8] sm:$0xff] (!%p762_p4)  ;;  %v824_v27 = vpack.c.bf16 (!%p762_p4), %v348_v23, %v347_v22  ;;  %v826_v28 = vpack.c.bf16 (!%p762_p4), %v366_v25, %v365_v24  ;;  %v349_v29 = vld [vmem:[#allocation10 + $0x40] sm:$0xff] (!%p762_p4)  ;;  %v367_v31 = vld [vmem:[#allocation10 + $0xd0] sm:$0xff] (!%p762_p4)  ;;  %s763_s1 = sshll.u32 (!%p762_p4), %s1633_s10, 3 }
  0xaa   : > { %437 = vmatprep.mubr.f32.mxu0 (!%p762_p4), %v340_v26  ;;  %v350_v30 = vld [vmem:[#allocation10 + $0x48] sm:$0xff] (!%p762_p4)  ;;  %v368_v32 = vld [vmem:[#allocation10 + $0xd8] sm:$0xff] (!%p762_p4)  ;;  %v351_v35 = vld [vmem:[#allocation10 + $0x50] sm:$0xff] (!%p762_p4)  ;;  %s444_s17 = scalar_lea.vmem (!%p762_p4), [#allocation2], %s763_s1 }
  0xab   : > { %817 = vmatpush3.bf16.msra.mxu0 %v816_v14  ;;  %v828_v33 = vpack.c.bf16 %v350_v30, %v349_v29  ;;  %v830_v34 = vpack.c.bf16 %v368_v32, %v367_v31  ;;  %v352_v36 = vld [vmem:[#allocation10 + $0x58] sm:$0xff]  ;;  %v369_v37 = vld [vmem:[#allocation10 + $0xe0] sm:$0xff]  ;;  %v370_v38 = vld [vmem:[#allocation10 + $0xe8] sm:$0xff] }
  0xac   : > { %819 = vmatprep.subr.bf16.mxu0 %v818_v15  ;;  %v832_v39 = vpack.c.bf16 %v352_v36, %v351_v35  ;;  %v834_v40 = vpack.c.bf16 %v370_v38, %v369_v37  ;;  %v353_v41 = vld [vmem:[#allocation10 + $0x60] sm:$0xff]  ;;  %v354_v42 = vld [vmem:[#allocation10 + $0x68] sm:$0xff]  ;;  %v371_v43 = vld [vmem:[#allocation10 + $0xf0] sm:$0xff] }
  0xad   : > { %v372_v44 = vld [vmem:[#allocation10 + $0xf8] sm:$0xff]  ;;  %v836_v45 = vpack.c.bf16 %v354_v42, %v353_v41  ;;  %v355_v47 = vld [vmem:[#allocation10 + $0x70] sm:$0xff] }
  0xae   : > { %v838_v46 = vpack.c.bf16 %v372_v44, %v371_v43  ;;  %v356_v48 = vld [vmem:[#allocation10 + $0x78] sm:$0xff]  ;;  %v339_v50 = vld [vmem:[%s286_s27] sm:$0xff] }
  0xaf   : > { %821 = vmatpush3.bf16.msra.mxu0 %v820_v20  ;;  %v840_v49 = vpack.c.bf16 %v356_v48, %v355_v47  ;;  %v446_v0 = vld [vmem:[#allocation3] sm:$0x1]  ;;  %v455_v3 = vld [vmem:[#allocation4] sm:$0x1] }
  0xb0   : > { %823 = vmatprep.subr.bf16.mxu0 %v822_v21 }
  0xb3   : > { %825 = vmatpush3.bf16.msra.mxu0 %v824_v27 }
  0xb4   : > { %827 = vmatprep.subr.bf16.mxu0 %v826_v28 }
  0xb7   : > { %829 = vmatpush3.bf16.msra.mxu0 %v828_v33 }
  0xb8   : > { %831 = vmatprep.subr.bf16.mxu0 %v830_v34 }
  0xbb   : > { %833 = vmatpush3.bf16.msra.mxu0 %v832_v39 }
  0xbc   : > { %835 = vmatprep.subr.bf16.mxu0 %v834_v40 }
  0xbf   : > { %837 = vmatpush3.bf16.msra.mxu0 %v836_v45 }
  0xc0   : > { %839 = vmatprep.subr.bf16.mxu0 %v838_v46 }
  0xc3   : > { %841 = vmatpush3.bf16.msra.mxu0 %v840_v49 }
  0xc6   : > { %438 = vmatmul.mubr.f32.vlgmr.msra.gmra.mrb[0].mxu0 %v339_v50 }
 0x199   : > { %v807_v51 = vpop.f32.mrb[0].mxu0 }
 0x19a   : > { %v808_v52 = vpop.f32.mrb[1].mxu0 }
 0x19b   : > { %v809_v53 = vadd.f32 %v808_v52, %v807_v51 }
 0x19d   : > { %445 = vst [vmem:[%s444_s17] sm:$0xff] %v809_v53  ;;  %v447_v54 = vrot.slane %v809_v53, 4  ;;  %v456_v55 = vmul.f32 %v809_v53, %v809_v53 }
 0x19f   : > { %v448_v56 = vadd.f32 %v809_v53, %v447_v54  ;;  %v457_v57 = vrot.slane %v456_v55, 4 }
 0x1a1   : > { %v449_v58 = vrot.slane %v448_v56, 2  ;;  %v458_v59 = vadd.f32 %v457_v57, %v456_v55 }
 0x1a3   : > { %v450_v60 = vadd.f32 %v449_v58, %v448_v56  ;;  %v459_v61 = vrot.slane %v458_v59, 2 }
 0x1a5   : > { %v451_v62 = vrot.slane %v450_v60, 1  ;;  %v460_v63 = vadd.f32 %v459_v61, %v458_v59 }
 0x1a7   : > { %v452_v1 = vadd.f32 %v451_v62, %v450_v60  ;;  %v461_v2 = vrot.slane %v460_v63, 1 }
 0x1a9   : > { %v453_v4 = vadd.f32 %v452_v1, %v446_v0  ;;  %v462_v5 = vadd.f32 %v461_v2, %v460_v63 }
 0x1ab   : > { %454 = vst [vmem:[#allocation3] sm:$0x1] %v453_v4  ;;  %v463_v6 = vadd.f32 %v462_v5, %v455_v3 }
 0x1ad   : > { %464 = vst [vmem:[#allocation4] sm:$0x1] %v463_v6 }
 0x1ae PF: > { %p465_p6 = scmp.eq.s32.totalorder %s1205_s28, 1 }
 0x1b0   : > { %p466_p10 = pnand %p465_p6, %p329_p1 }
 0x1b1   : > { %s1635_s19 = sld [smem:[#allocation25_spill]] (!%p466_p10)  ;;  %s1636_s12 = sld [smem:[#allocation26_spill]] (!%p466_p10) }
 0x1b2   : > { %469 = sbr.rel (%p466_p10) target bundleno = 463 (0x1cf), region = 68  ;;  %v470_v7 = vld [vmem:[#allocation3] sm:$0x1] (!%p466_p10) }
 0x1b3   : > { %v471_v9 = vmul.f32 (!%p466_p10), 0.03125, %v470_v7 }
 0x1b4   : > { %v472_v8 = vld [vmem:[#allocation4] sm:$0x1] (!%p466_p10) }
 0x1b5   : > { %v473_v10 = vmul.f32 (!%p466_p10), 0.03125, %v472_v8  ;;  %v474_v11 = vmul.f32 (!%p466_p10), %v471_v9, %v471_v9 }
 0x1b7   : > { %v475_v12 = vsub.f32 (!%p466_p10), %v473_v10, %v474_v11  ;;  %v477_v15 = vld [vmem:[%s1635_s19] sm:$0x1] (!%p466_p10) }
 0x1b8   : > { %v482_v18 = vld [vmem:[%s1636_s12] sm:$0x1] (!%p466_p10) }
 0x1b9   : > { %v476_v13 = vmax.f32 %v475_v12, 0.0 }
 0x1bb   : > { %v478_v14 = vadd.f32 1e-05, %v476_v13 }
 0x1bd   : > { %1003 = vrsqrt.f32 %v478_v14 }
 0x1c7   : > { %v1004_v16 = vpop.eup %1003 }
 0x1c8   : > { %v480_v17 = vmul.f32 %v1004_v16, %v477_v15 }
 0x1ca   : > { %481 = vst [vmem:[#allocation5] sm:$0x1] %v480_v17  ;;  %v483_v19 = vmul.f32 %v480_v17, %v471_v9 }
 0x1cc   : > { %v484_v20 = vsub.f32 %v482_v18, %v483_v19 }
 0x1ce   : > { %485 = vst [vmem:[#allocation6] sm:$0x1] %v484_v20 }
 0x1cf PF: > { %p764_p11 = scmp.ne.s32.totalorder %s1205_s28, 1 }
 0x1d0   : > { %v510_v21 = vld [vmem:[#allocation12 + $0x8] sm:$0xff] (!%p764_p11)  ;;  %v512_v22 = vld [vmem:[#allocation12 + $0x18] sm:$0xff] (!%p764_p11)  ;;  %v509_v23 = vld [vmem:[#allocation12] sm:$0xff] (!%p764_p11)  ;;  %v1227_v28 = vmov (!%p764_p11), 0.0   ;;  %s1637_s20 = sld [smem:[#allocation18_spill]] (!%p764_p11)  ;;  %v543_v12 = vlaneseq (!%p764_p11)  ;;  %s1638_s27 = sld [smem:[#allocation27_spill]] (!%p764_p11) }
 0x1d1   : > { %488 = sbr.rel (%p764_p11) target bundleno = 715 (0x2cb), region = 72  ;;  %v842_v24 = vpack.c.bf16 (!%p764_p11), %v512_v22, %v510_v21  ;;  %v511_v25 = vld [vmem:[#allocation12 + $0x10] sm:$0xff] (!%p764_p11)  ;;  %v514_v26 = vld [vmem:[#allocation12 + $0x28] sm:$0xff] (!%p764_p11)  ;;  %v516_v27 = vld [vmem:[#allocation12 + $0x38] sm:$0xff] (!%p764_p11)  ;;  %617 = vmatprep.mubr.f32.mxu0 (!%p764_p11), %v1227_v28 }
 0x1d2   : > { %v844_v29 = vpack.c.bf16 (!%p764_p11), %v511_v25, %v509_v23  ;;  %v846_v30 = vpack.c.bf16 (!%p764_p11), %v516_v27, %v514_v26  ;;  %v513_v31 = vld [vmem:[#allocation12 + $0x20] sm:$0xff] (!%p764_p11)  ;;  %v515_v32 = vld [vmem:[#allocation12 + $0x30] sm:$0xff] (!%p764_p11)  ;;  %v518_v33 = vld [vmem:[#allocation12 + $0x48] sm:$0xff] (!%p764_p11)  ;;  %v544_v13 = vshrl.u32 (!%p764_p11), %v543_v12, 7 }
 0x1d3   : > { %843 = vmatprep.subr.bf16.mxu0 (!%p764_p11), %v842_v24  ;;  %v520_v34 = vld [vmem:[#allocation12 + $0x58] sm:$0xff] (!%p764_p11)  ;;  %v848_v35 = vpack.c.bf16 (!%p764_p11), %v515_v32, %v513_v31  ;;  %v517_v37 = vld [vmem:[#allocation12 + $0x40] sm:$0xff] (!%p764_p11)  ;;  %v519_v38 = vld [vmem:[#allocation12 + $0x50] sm:$0xff] (!%p764_p11) }
 0x1d4   : > { %845 = vmatpush1.bf16.msra.mxu0 (!%p764_p11), %v844_v29  ;;  %v850_v36 = vpack.c.bf16 (!%p764_p11), %v520_v34, %v518_v33  ;;  %v522_v39 = vld [vmem:[#allocation12 + $0x68] sm:$0xff] (!%p764_p11)  ;;  %v524_v40 = vld [vmem:[#allocation12 + $0x78] sm:$0xff] (!%p764_p11)  ;;  %v852_v41 = vpack.c.bf16 (!%p764_p11), %v519_v38, %v517_v37  ;;  %v521_v43 = vld [vmem:[#allocation12 + $0x60] sm:$0xff] (!%p764_p11)  ;;  %v545_v14 = vsub.s32 (!%p764_p11), 0, %v544_v13  ;;  %v549_v16 = vsub.s32 (!%p764_p11), 1, %v544_v13 }
 0x1d5   : > { %847 = vmatprep.subr.bf16.mxu0 (!%p764_p11), %v846_v30  ;;  %v854_v42 = vpack.c.bf16 (!%p764_p11), %v524_v40, %v522_v39  ;;  %v523_v44 = vld [vmem:[#allocation12 + $0x70] sm:$0xff] (!%p764_p11)  ;;  %v526_v45 = vld [vmem:[#allocation12 + $0x88] sm:$0xff] (!%p764_p11)  ;;  %v528_v46 = vld [vmem:[#allocation12 + $0x98] sm:$0xff] (!%p764_p11) }
 0x1d6   : > { %v856_v47 = vpack.c.bf16 (!%p764_p11), %v523_v44, %v521_v43  ;;  %v858_v48 = vpack.c.bf16 (!%p764_p11), %v528_v46, %v526_v45  ;;  %v525_v49 = vld [vmem:[#allocation12 + $0x80] sm:$0xff] (!%p764_p11)  ;;  %v527_v50 = vld [vmem:[#allocation12 + $0x90] sm:$0xff] (!%p764_p11)  ;;  %v530_v51 = vld [vmem:[#allocation12 + $0xa8] sm:$0xff] (!%p764_p11)  ;;  %s765_s13 = sshll.u32 (!%p764_p11), %s1637_s20, 3 }
 0x1d7   : > { %v532_v52 = vld [vmem:[#allocation12 + $0xb8] sm:$0xff] (!%p764_p11)  ;;  %v860_v53 = vpack.c.bf16 (!%p764_p11), %v527_v50, %v525_v49  ;;  %v529_v55 = vld [vmem:[#allocation12 + $0xa0] sm:$0xff] (!%p764_p11)  ;;  %v531_v56 = vld [vmem:[#allocation12 + $0xb0] sm:$0xff] (!%p764_p11)  ;;  %s490_s8 = scalar_lea.vmem (!%p764_p11), [#allocation2], %s765_s13 }
 0x1d8   : > { %849 = vmatpush1.bf16.msra.mxu0 %v848_v35  ;;  %v862_v54 = vpack.c.bf16 %v532_v52, %v530_v51  ;;  %v534_v57 = vld [vmem:[#allocation12 + $0xc8] sm:$0xff]  ;;  %v536_v58 = vld [vmem:[#allocation12 + $0xd8] sm:$0xff]  ;;  %v864_v59 = vpack.c.bf16 %v531_v56, %v529_v55  ;;  %v533_v63 = vld [vmem:[#allocation12 + $0xc0] sm:$0xff] }
 0x1d9   : > { %851 = vmatprep.subr.bf16.mxu0 %v850_v36  ;;  %v491_v60 = vld [vmem:[%s490_s8] sm:$0xff]  ;;  %v866_v62 = vpack.c.bf16 %v536_v58, %v534_v57  ;;  %v535_v0 = vld [vmem:[#allocation12 + $0xd0] sm:$0xff]  ;;  %v538_v1 = vld [vmem:[#allocation12 + $0xe8] sm:$0xff] }
 0x1da   : > { %v766_v61 = vld [vmem:[#allocation5] ss:$0 sm:$0xff]  ;;  %v868_v4 = vpack.c.bf16 %v535_v0, %v533_v63  ;;  %v767_v5 = vld [vmem:[#allocation6] ss:$0 sm:$0xff]  ;;  %v537_v7 = vld [vmem:[#allocation12 + $0xe0] sm:$0xff] }
 0x1db   : > { %v540_v2 = vld [vmem:[#allocation12 + $0xf8] sm:$0xff]  ;;  %v499_v3 = vmul.f32 %v766_v61, %v491_v60  ;;  %v539_v8 = vld [vmem:[#allocation12 + $0xf0] sm:$0xff] }
 0x1dc   : > { %853 = vmatpush1.bf16.msra.mxu0 %v852_v41  ;;  %v870_v6 = vpack.c.bf16 %v540_v2, %v538_v1  ;;  %v872_v10 = vpack.c.bf16 %v539_v8, %v537_v7  ;;  %v541_v15 = vld [vmem:[%s1638_s27] sm:$0x3] }
 0x1dd   : > { %855 = vmatprep.subr.bf16.mxu0 %v854_v42  ;;  %v507_v9 = vadd.f32 %v767_v5, %v499_v3  ;;  %v546_v17 = vrot.slane %v541_v15, %v545_v14  ;;  %v550_v18 = vrot.slane %v541_v15, %v549_v16 }
 0x1df   : > { %v508_v11 = vmax.f32 %v507_v9, 0.0 }
 0x1e0   : > { %857 = vmatpush1.bf16.msra.mxu0 %v856_v47 }
 0x1e1   : > { %859 = vmatprep.subr.bf16.mxu0 %v858_v48 }
 0x1e4   : > { %861 = vmatpush1.bf16.msra.mxu0 %v860_v53 }
 0x1e5   : > { %863 = vmatprep.subr.bf16.mxu0 %v862_v54 }
 0x1e8   : > { %865 = vmatpush1.bf16.msra.mxu0 %v864_v59 }
 0x1e9   : > { %867 = vmatprep.subr.bf16.mxu0 %v866_v62 }
 0x1ec   : > { %869 = vmatpush1.bf16.msra.mxu0 %v868_v4 }
 0x1ed   : > { %871 = vmatprep.subr.bf16.mxu0 %v870_v6 }
 0x1f0   : > { %873 = vmatpush1.bf16.msra.mxu0 %v872_v10 }
 0x1f3   : > { %618 = vmatmul.mubr.f32.vlgmr.msra.gmra.mrb[0].mxu0 %v508_v11 }
 0x2c6   : > { %v619_v19 = vpop.f32.mrb[0].mxu0 }
 0x2c7   : > { %v620_v20 = vadd.f32 %v619_v19, %v546_v17  ;;  %v621_v21 = vpop.f32.mrb[1].mxu0 }
 0x2c8   : > { %v622_v22 = vadd.f32 %v621_v21, %v550_v18 }
 0x2c9   : > { %624 = vst [vmem:[%s1500_s11] sm:$0xff] %v620_v20 }
 0x2ca   : > { %625 = vst [vmem:[%s1500_s11 + $0x8] sm:$0xff] %v622_v22 }
 0x2cb PF: > { %s1639_s14 = sld [smem:[#allocation18_spill]]  ;;  %s1640_s6 = sld [smem:[#allocation21_spill]] }
 0x2cc   : > { %s642_s1 = sshll.u32 %s1500_s11, 4  ;;  %s1641_s30 = sld [smem:[#allocation28_spill]]  ;;  %s1527_s1 = int_to_ptr.vmem [resolvable:$true] %s642_s1 }
 0x2cd   : > { %s627_s18 = scalar_lea.sflag [#allocation9], %s320_s16  ;;  %s1091_s12 = scalar_lea.vmem %s1527_s1, 256 }
 0x2ce   : > { %p1092_p5 = scmp.ne.s32.totalorder %s1527_s1, %s1091_s12  ;;  %s1228_s20 = smov [#allocation13]  }
 0x2d1   : > { %s634_s10 = smul.u32 %s1639_s14, %s1205_s28  ;;  %p1643_p8 = scmp.ne.s32.totalorder %s1640_s6, 0 }
 0x2d2   : > { %s1642_s19 = smov %s1641_s30  ;;  %s1095_s28 = sshll.u32 %s1228_s20, 4  ;;  %s1096_s28 = int_to_ptr.vmem [resolvable:$false] %s1095_s28 }
 0x2d3   : > { %s774_s17 = sshll.u32 %s634_s10, 8  ;;  %p1093_p12 = pnand %p1092_p5, %p1643_p8 }
 0x2d4   : > { %s640_s15 = scalar_lea.hbm %s1641_s30, %s774_s17  ;;  %s1097_s11 = scalar_lea.vmem %s1096_s28, 512 }
 0x2d5   : > { %p1094_p2 = pneg %p1093_p12  ;;  %p1098_p9 = scmp.lt.s32.totalorder %s1527_s1, %s1096_s28 }
 0x2d6   : > { %p1099_p7 = scmp.lt.s32.totalorder %s1097_s11, %s1091_s12 }
 0x2d8   : > { %p1100_p0 = por %p1099_p7, %p1098_p9 }
 0x2da   : > { %p1101_p3 = pnand %p1100_p0, %p1094_p2 }
 0x2dc   : > { %1104 = shalt.err (!%p1101_p3)
}
 0x2dd   : > { %s1105_s13 = scalar_lea.hbm %s640_s15, 256  ;;  %s1109_s9 = scalar_lea.hbm %s1642_s19, 1024 }
 0x2de   : > { %p1106_p1 = scmp.ne.s32.totalorder %s640_s15, %s1105_s13  ;;  %p1110_p6 = scmp.lt.u32.totalorder %s640_s15, %s1642_s19 }
 0x2df   : > { %p1111_p10 = scmp.lt.u32.totalorder %s1109_s9, %s1105_s13  ;;  %p1113_p5 = scmp.lt.u32.totalorder %s1105_s13, %s640_s15 }
 0x2e0   : > { %p1107_p13 = pnand %p1106_p1, %p1643_p8 }
 0x2e1   : > { %p1112_p11 = por %p1111_p10, %p1110_p6 }
 0x2e2   : > { %p1108_p4 = pneg %p1107_p13 }
 0x2e3   : > { %p1114_p12 = por %p1113_p5, %p1112_p11 }
 0x2e5   : > { %p1115_p2 = pnand %p1114_p12, %p1108_p4 }
 0x2e7   : > { %1118 = shalt.err (!%p1115_p2)
}
 0x2e8   : > { %884 = dma.vmem_to_hbm [thread:$0]  (%p1643_p8), %s1527_s1, 256, %s640_s15, %s627_s18  }
 0x2e9 PF: > { %s1644_s14 = sld [smem:[#allocation17_spill]]  ;;  %s1645_s10 = sld [smem:[#allocation22_spill]] }
 0x2ea   : > { %p906_p9 = scmp.ge.s32.totalorder %s1217_s7, 2 }
 0x2ef   : > { %s654_s17 = sand.u32 1, %s1644_s14   ;;  %p1646_p7 = scmp.ne.s32.totalorder %s1645_s10, 0 }
 0x2f0   : > { %s655_s2 = scalar_lea.sflag [#allocation9], %s654_s17 }
 0x2f1   : > { %p898_p0 = pnand %p906_p9, %p1646_p7 }
 0x2f3   : > { %1172 = dma.done.wait (!%p898_p0), %s655_s2, 256  }
 0x2f4   : > { %1174 = vsyncadd (!%p898_p0), %s655_s2, 4294967040  ;;  %s23_s7 = sadd.s32 1, %s1217_s7   ;;  %s1647_s27 = sld [smem:[#allocation19_spill]] }
 0x2f5   : > { %p20_p3 = scmp.ge.s32.totalorder %s23_s7, 10   ;;  %s1648_s28 = sld [smem:[#allocation20_spill]] }
 0x2f6   : > { %s1649_s6 = smov %s1660_s24  ;;  %s1650_s1 = smov %s1664_s21 }
 0x2f7   : > { %s1651_s21 = smov %s1181_s22  ;;  %s1652_s22 = smov %s1185_s23 }
 0x2f8   : > { %s1653_s23 = smov %s1437_s3  ;;  %s1654_s24 = smov %s1193_s25 }
 0x2f9   : > { %s1655_s25 = smov %s1197_s26  ;;  %s1656_s26 = smov %s1434_s4 }
 0x2fa   : > { %s1657_s29 = smov %s1649_s6  ;;  %s1658_s30 = smov %s1650_s1 }
 0x2fb   :  { %22 = sbr.rel (!%p20_p3) target bundleno = 17 (0x11), region = 115 }
 0x302   :  { %660 = vsyncpa [#allocation8], 1 }
 0x303   :  { %662 = vsyncpa [#allocation8 + $0x1], 1 }
 0x304   :  { %663 = vsyncpa [#allocation11], 1 }
 0x305   :  { %664 = vsyncpa [#allocation9], 1 }
 0x306   :  { %666 = vsyncpa [#allocation9 + $0x1], 1 }

</bundles_post_ra>
